<compile_context>
chip_gen: v5e
topology: v5e:2x2
jax: 0.10.0
libtpu: 0.0.40
codegen_flags: <defaults>
</compile_context>

<pallas_src>
import math
from functools import partial

import jax
import jax.numpy as jnp
from jax import lax
from jax.experimental import pallas as pl
from jax.experimental.pallas import tpu as pltpu

# ---------------- configuration (small, consistent with the module) ----------------
B = 2          # batch
N = 16         # points1 / features1 count
M = 8          # points2 / features2 count (queries)
IN_CH = 32     # in_ch
OUT_CH = 32    # out_ch
N_HEAD = 4
NSAMPLE = 8    # neighbors per query
LN_EPS = 1e-5  # PyTorch nn.LayerNorm default


def _round_up(x, m):
    return ((x + m - 1) // m) * m


def _slab_dims(c, c_out, n_head):
    """Row/lane layout of the packed bf16 weight slab (shared by pack_params + kernel)."""
    pos_row = _round_up(c, 8)                          # Wpos / hmask_t band start
    hm_row = pos_row + _round_up(max(3, n_head), 8)    # hmask band start
    rows = _round_up(hm_row + c, 8)
    lanes = _round_up(max(3 * c + c_out, 2 * c), 128)
    return pos_row, hm_row, rows, lanes


def pack_params(params, n_head):
    """One-time packing: all weights/masks -> ONE bf16 slab, all biases -> ONE f32 slab.

    Call once, reuse across forward calls (hoisted out of the per-call path).
    """
    c = params["wq"].shape[0]
    c_out = params["wout"].shape[1]
    head_ch = c // n_head if c // n_head > 1 else c
    pos_row, hm_row, rows, lanes = _slab_dims(c, c_out, n_head)

    head_of = jnp.arange(c) // head_ch
    hmask = (head_of[:, None] == jnp.arange(n_head)[None, :]).astype(jnp.float32)  # [C,H]

    w = jnp.zeros((rows, lanes), jnp.float32)
    w = w.at[0:c, 0:c].set(params["wq"])
    w = w.at[0:c, c:2 * c].set(params["wk"])
    w = w.at[0:c, 2 * c:3 * c].set(params["wv"])
    w = w.at[0:c, 3 * c:3 * c + c_out].set(params["wout"])
    w = w.at[pos_row:pos_row + 3, 0:c].set(params["wpos"])
    w = w.at[pos_row:pos_row + n_head, c:2 * c].set(hmask.T)       # hmask_t [H, C]
    w = w.at[hm_row:hm_row + c, 0:n_head].set(hmask)               # hmask   [C, H]
    wslab = w.astype(jnp.bfloat16)   # masks exact in bf16; weights consumed at bf16 anyway

    blanes = _round_up(max(2 * c, c_out, c), 128)
    bsl = jnp.zeros((8, blanes), jnp.float32)
    bsl = bsl.at[0, 0:c].set(params["bq"][0])
    bsl = bsl.at[1, 0:c].set(params["bk"][0])
    bsl = bsl.at[1, c:2 * c].set(params["bv"][0])
    bsl = bsl.at[2, 0:c].set(params["bpos"][0])
    bsl = bsl.at[3, 0:c_out].set(params["bout"][0])
    bsl = bsl.at[4, 0:c].set(params["g1"][0])
    bsl = bsl.at[5, 0:c].set(params["b1"][0])
    bsl = bsl.at[6, 0:c_out].set(params["g2"][0])
    bsl = bsl.at[7, 0:c_out].set(params["b2"][0])
    return wslab, bsl


def _mm_bf16(a, w_bf16):
    """bf16 MXU inputs, f32 accumulation (weights are already stored as bf16)."""
    return jnp.dot(a.astype(jnp.bfloat16), w_bf16, preferred_element_type=jnp.float32)


def _layernorm(x, gamma, beta):
    mu = jnp.mean(x, axis=-1, keepdims=True)
    var = jnp.mean((x - mu) ** 2, axis=-1, keepdims=True)
    return (x - mu) * lax.rsqrt(var + LN_EPS) * gamma + beta


def _make_kernel(bt, m, n, s, c, c_out, n_head):
    """Kernel for one grid step handling `bt` batch elements."""
    head_ch = c // n_head if c // n_head > 1 else c
    scale = 1.0 / math.sqrt(head_ch)
    mq, ms = bt * m, bt * m * s
    pos_row, hm_row, _, _ = _slab_dims(c, c_out, n_head)

    def rep(x):
        # Repeat each query row across its S neighbors: sublane broadcast + collapse.
        return jnp.broadcast_to(x[:, None, :], (mq, s, x.shape[-1])).reshape(ms, x.shape[-1])

    def kernel(f2_ref, p2_ref, f1_ref, p1_ref, oh_ref, w_ref, b_ref, o_ref):
        # ---- packed parameters: static window slices of the two slabs ----
        wq = w_ref[0:c, 0:c]
        wkv = w_ref[0:c, c:3 * c]
        wout = w_ref[0:c, 3 * c:3 * c + c_out]
        wpos = w_ref[pos_row:pos_row + 3, 0:c]
        hm_t = w_ref[pos_row:pos_row + n_head, c:2 * c].astype(jnp.float32)   # [H, C]
        hm = w_ref[hm_row:hm_row + c, 0:n_head].astype(jnp.float32)           # [C, H]
        bq, bkv = b_ref[0:1, 0:c], b_ref[1:2, 0:2 * c]
        bpos, bout = b_ref[2:3, 0:c], b_ref[3:4, 0:c_out]
        g1, b1 = b_ref[4:5, 0:c], b_ref[5:6, 0:c]
        g2, b2 = b_ref[6:7, 0:c_out], b_ref[7:8, 0:c_out]

        f2 = f2_ref[...]                                    # [MQ, C]  residual input (f32)
        onehot = oh_ref[...].astype(jnp.float32)            # [BT, M*S, N]  exact 0/1

        # ---- linear_q / linear_k / linear_v (bf16 MXU, f32 accumulate) ----
        q = _mm_bf16(f2, wq) + bq                           # [MQ, C]
        kv = _mm_bf16(f1_ref[...], wkv) + bkv               # [BT*N, 2C] = [k | v]

        # ---- index_points(.) : per-batch one-hot gathers (f32 -> exact selection) ----
        g_kv = jnp.einsum('bsn,bnc->bsc', onehot, kv.reshape(bt, n, 2 * c),
                          preferred_element_type=jnp.float32).reshape(ms, 2 * c)
        g_p1 = jnp.einsum('bsn,bnc->bsc', onehot, p1_ref[...],
                          preferred_element_type=jnp.float32).reshape(ms, 3)
        k_nb, v_nb = g_kv[:, :c], g_kv[:, c:]

        # ---- legacy_pos_encoding('coords') + pos_encoder(Linear(3,C) + ReLU) ----
        rela = rep(p2_ref[...]) - g_p1                      # (p2 - p1_neigh), f32
        pos = jnp.maximum(_mm_bf16(rela, wpos) + bpos, 0.0)  # expanded_f  [MS, C]
        v_eff = v_nb + pos                                   # v_neigh + expanded_f

        # ---- multi-head attention over the S neighbors (head-mask matmuls) ----
        logits = jnp.dot(rep(q) * k_nb, hm,
                         preferred_element_type=jnp.float32) * scale          # [MS, H]
        lg = logits.reshape(mq, s, n_head)
        lg = lg - jnp.max(lg, axis=1, keepdims=True)        # softmax over neighbors
        ex = jnp.exp(lg)
        inv = pl.reciprocal(jnp.sum(ex, axis=1, keepdims=True), approx=True)
        attn = (ex * inv).reshape(ms, n_head)
        weighted = jnp.dot(attn, hm_t, preferred_element_type=jnp.float32) * v_eff
        agg = jnp.sum(weighted.reshape(mq, s, c), axis=1)   # [MQ, C]

        # ---- residual + att_norm (att_dropout = identity) ----
        res = _layernorm(f2 + agg, g1, b1)

        # ---- layer_out: Linear(C, C_out) + LayerNorm(C_out) ----
        out = _mm_bf16(res, wout) + bout
        o_ref[...] = _layernorm(out, g2, b2).astype(o_ref.dtype)

    return kernel


def _resolve_b_tile(bb):
    # v7x has 2 TensorCores/chip: split the batch into 2 "parallel" grid steps.
    # v5e / v6e have 1 TC: whole batch in a single grid step (no per-step overhead).
    try:
        kind = jax.devices()[0].device_kind.lower()
    except Exception:
        kind = ""
    if bb % 2 == 0 and "v7" in kind:
        return bb // 2
    return bb


@partial(jax.jit, static_argnames=("n_head", "c_out", "b_tile"))
def _forward(points1, points2, features1, features2, grouped_idx, wslab, bslab,
             *, n_head, c_out, b_tile):
    bb, n, _ = points1.shape
    _, m, _ = points2.shape
    s = grouped_idx.shape[-1]
    c = features1.shape[-1]
    assert bb % b_tile == 0
    t = bb // b_tile
    mq = b_tile * m

    # Layout plumbing only (no per-call weight re-packing, no feature/point concat).
    f2 = features2.reshape(bb * m, c)
    p2x = points2[..., :3].reshape(bb * m, 3)
    f1 = features1.reshape(bb * n, c)
    p1x = points1[..., :3]                                            # [B, N, 3]
    onehot = jax.nn.one_hot(grouped_idx.reshape(bb, m * s).astype(jnp.int32),
                            n, dtype=jnp.bfloat16)                    # exact 0/1

    kernel = _make_kernel(b_tile, m, n, s, c, c_out, n_head)

    flops = 2 * bb * (m * c * c + n * c * 2 * c + m * s * n * (2 * c + 3)
                      + m * s * 3 * c + 2 * m * s * c * n_head + m * c * c_out)
    bytes_accessed = (4 * (f2.size + p2x.size + f1.size + p1x.size + bslab.size
                           + bb * m * c_out)
                      + 2 * (onehot.size + wslab.size))
    cost = pl.CostEstimate(flops=flops, transcendentals=bb * m * s * n_head,
                           bytes_accessed=bytes_accessed)

    out2d = pl.pallas_call(
        kernel,
        out_shape=jax.ShapeDtypeStruct((bb * m, c_out), jnp.float32),
        grid=(t,),
        in_specs=[
            pl.BlockSpec((mq, c), lambda i: (i, 0)),                 # features2
            pl.BlockSpec((mq, 3), lambda i: (i, 0)),                 # points2 xyz
            pl.BlockSpec((b_tile * n, c), lambda i: (i, 0)),         # features1
            pl.BlockSpec((b_tile, n, 3), lambda i: (i, 0, 0)),       # points1 xyz
            pl.BlockSpec((b_tile, m * s, n), lambda i: (i, 0, 0)),   # one-hot gather
            pl.BlockSpec(wslab.shape, lambda i: (0, 0)),             # packed weights (bf16)
            pl.BlockSpec(bslab.shape, lambda i: (0, 0)),             # packed biases  (f32)
        ],
        out_specs=pl.BlockSpec((mq, c_out), lambda i: (i, 0)),
        compiler_params=pltpu.CompilerParams(dimension_semantics=("parallel",)),
        cost_estimate=cost,
    )(f2, p2x, f1, p1x, onehot, wslab, bslab)
    return out2d.reshape(bb, m, c_out)


def neighbor_geometric_attention(points1, points2, features1, features2, grouped_idx,
                                 wslab, bslab, *, n_head=N_HEAD, c_out=OUT_CH,
                                 b_tile=None):
    if b_tile is None:
        b_tile = _resolve_b_tile(points1.shape[0])
    return _forward(points1, points2, features1, features2, grouped_idx, wslab, bslab,
                    n_head=n_head, c_out=c_out, b_tile=b_tile)


def init_params(key):
    # Deterministic synthetic init (PyTorch-Linear-style uniform bounds).
    ks = jax.random.split(key, 5)

    def linear(k, fan_in, fan_out):
        bound = 1.0 / math.sqrt(fan_in)
        kw, kb = jax.random.split(k)
        w = jax.random.uniform(kw, (fan_in, fan_out), jnp.float32, -bound, bound)
        b = jax.random.uniform(kb, (1, fan_out), jnp.float32, -bound, bound)
        return w, b

    wq, bq = linear(ks[0], IN_CH, IN_CH)
    wk, bk = linear(ks[1], IN_CH, IN_CH)
    wv, bv = linear(ks[2], IN_CH, IN_CH)
    wpos, bpos = linear(ks[3], 3, IN_CH)
    wout, bout = linear(ks[4], IN_CH, OUT_CH)
    g1 = jnp.ones((1, IN_CH), jnp.float32)
    b1 = jnp.zeros((1, IN_CH), jnp.float32)
    g2 = jnp.ones((1, OUT_CH), jnp.float32)
    b2 = jnp.zeros((1, OUT_CH), jnp.float32)
    return dict(wq=wq, bq=bq, wk=wk, bk=bk, wv=wv, bv=bv,
                wpos=wpos, bpos=bpos, g1=g1, b1=b1,
                wout=wout, bout=bout, g2=g2, b2=b2)


if __name__ == "__main__":
    key = jax.random.PRNGKey(0)
    k1, k2, k3, k4, k5, kp = jax.random.split(key, 6)

    points1 = jax.random.normal(k1, (B, N, 3), jnp.float32)
    points2 = jax.random.normal(k2, (B, M, 3), jnp.float32)
    features1 = jax.random.normal(k3, (B, N, IN_CH), jnp.float32)
    features2 = jax.random.normal(k4, (B, M, IN_CH), jnp.float32)
    grouped_idx = jax.random.randint(k5, (B, M, NSAMPLE), 0, N, jnp.int32)

    params = init_params(kp)
    # One-time packing (hoisted out of the per-call path; reuse across forward calls).
    wslab, bslab = pack_params(params, N_HEAD)

    out = neighbor_geometric_attention(points1, points2, features1, features2,
                                       grouped_idx, wslab, bslab)
    jax.block_until_ready(out)
    assert out.shape == (B, M, OUT_CH)
    print("KERNEL_OK")
</pallas_src>

<mosaic_0001>
module attributes {stable_mosaic.version = 11 : i64} {
  func.func @kernel(%arg0: i32, %arg1: memref<16x32xf32, #tpu.memory_space<vmem>>, %arg2: memref<16x3xf32, #tpu.memory_space<vmem>>, %arg3: memref<32x32xf32, #tpu.memory_space<vmem>>, %arg4: memref<2x16x3xf32, #tpu.memory_space<vmem>>, %arg5: memref<2x64x16xbf16, #tpu.memory_space<vmem>>, %arg6: memref<72x128xbf16, #tpu.memory_space<vmem>>, %arg7: memref<8x128xf32, #tpu.memory_space<vmem>>, %arg8: memref<16x32xf32, #tpu.memory_space<vmem>>) attributes {dimension_semantics = [#tpu.dimension_semantics<parallel>], iteration_bounds = array<i64: 1>, scalar_prefetch = 0 : i64, scratch_operands = 0 : i64, tpu.core_type = #tpu.core_type<tc>, window_params = [{transform_indices = @transform_0, window_bounds = array<i64: 16, 32>}, {transform_indices = @transform_1, window_bounds = array<i64: 16, 3>}, {transform_indices = @transform_2, window_bounds = array<i64: 32, 32>}, {transform_indices = @transform_3, window_bounds = array<i64: 2, 16, 3>}, {transform_indices = @transform_4, window_bounds = array<i64: 2, 64, 16>}, {pipeline_mode = #tpu.pipeline_mode<synchronous>, transform_indices = @transform_5, window_bounds = array<i64: 72, 128>}, {pipeline_mode = #tpu.pipeline_mode<synchronous>, transform_indices = @transform_6, window_bounds = array<i64: 8, 128>}, {transform_indices = @transform_7, window_bounds = array<i64: 16, 32>}]} {
    %c0 = arith.constant 0 : index
    %c0_0 = arith.constant 0 : index
    %0 = vector.load %arg6[%c0, %c0_0] : memref<72x128xbf16, #tpu.memory_space<vmem>>, vector<32x32xbf16>
    %c0_1 = arith.constant 0 : index
    %c32 = arith.constant 32 : index
    %1 = vector.load %arg6[%c0_1, %c32] : memref<72x128xbf16, #tpu.memory_space<vmem>>, vector<32x64xbf16>
    %c0_2 = arith.constant 0 : index
    %c96 = arith.constant 96 : index
    %2 = vector.load %arg6[%c0_2, %c96] : memref<72x128xbf16, #tpu.memory_space<vmem>>, vector<32x32xbf16>
    %c32_3 = arith.constant 32 : index
    %c0_4 = arith.constant 0 : index
    %3 = vector.load %arg6[%c32_3, %c0_4] : memref<72x128xbf16, #tpu.memory_space<vmem>>, vector<3x32xbf16>
    %c32_5 = arith.constant 32 : index
    %c32_6 = arith.constant 32 : index
    %4 = vector.load %arg6[%c32_5, %c32_6] : memref<72x128xbf16, #tpu.memory_space<vmem>>, vector<4x32xbf16>
    %5 = arith.extf %4 : vector<4x32xbf16> to vector<4x32xf32>
    %c40 = arith.constant 40 : index
    %c0_7 = arith.constant 0 : index
    %6 = vector.load %arg6[%c40, %c0_7] : memref<72x128xbf16, #tpu.memory_space<vmem>>, vector<32x4xbf16>
    %7 = arith.extf %6 : vector<32x4xbf16> to vector<32x4xf32>
    %c0_8 = arith.constant 0 : index
    %c0_9 = arith.constant 0 : index
    %8 = vector.load %arg7[%c0_8, %c0_9] : memref<8x128xf32, #tpu.memory_space<vmem>>, vector<1x32xf32>
    %c1 = arith.constant 1 : index
    %c0_10 = arith.constant 0 : index
    %9 = vector.load %arg7[%c1, %c0_10] : memref<8x128xf32, #tpu.memory_space<vmem>>, vector<1x64xf32>
    %c2 = arith.constant 2 : index
    %c0_11 = arith.constant 0 : index
    %10 = vector.load %arg7[%c2, %c0_11] : memref<8x128xf32, #tpu.memory_space<vmem>>, vector<1x32xf32>
    %c3 = arith.constant 3 : index
    %c0_12 = arith.constant 0 : index
    %11 = vector.load %arg7[%c3, %c0_12] : memref<8x128xf32, #tpu.memory_space<vmem>>, vector<1x32xf32>
    %c4 = arith.constant 4 : index
    %c0_13 = arith.constant 0 : index
    %12 = vector.load %arg7[%c4, %c0_13] : memref<8x128xf32, #tpu.memory_space<vmem>>, vector<1x32xf32>
    %c5 = arith.constant 5 : index
    %c0_14 = arith.constant 0 : index
    %13 = vector.load %arg7[%c5, %c0_14] : memref<8x128xf32, #tpu.memory_space<vmem>>, vector<1x32xf32>
    %c6 = arith.constant 6 : index
    %c0_15 = arith.constant 0 : index
    %14 = vector.load %arg7[%c6, %c0_15] : memref<8x128xf32, #tpu.memory_space<vmem>>, vector<1x32xf32>
    %c7 = arith.constant 7 : index
    %c0_16 = arith.constant 0 : index
    %15 = vector.load %arg7[%c7, %c0_16] : memref<8x128xf32, #tpu.memory_space<vmem>>, vector<1x32xf32>
    %c0_17 = arith.constant 0 : index
    %c0_18 = arith.constant 0 : index
    %16 = vector.load %arg1[%c0_17, %c0_18] : memref<16x32xf32, #tpu.memory_space<vmem>>, vector<16x32xf32>
    %c0_19 = arith.constant 0 : index
    %c0_20 = arith.constant 0 : index
    %c0_21 = arith.constant 0 : index
    %17 = vector.load %arg5[%c0_19, %c0_20, %c0_21] : memref<2x64x16xbf16, #tpu.memory_space<vmem>>, vector<2x64x16xbf16>
    %18 = arith.extf %17 : vector<2x64x16xbf16> to vector<2x64x16xf32>
    %19 = arith.truncf %16 : vector<16x32xf32> to vector<16x32xbf16>
    %cst = arith.constant dense<0.000000e+00> : vector<16x32xf32>
    %20 = tpu.matmul %19, %0, %cst {dimension_numbers = #tpu.dot_dimension_numbers<[1], [0], [0], [1], [0, 0, 1, 1], [], []>} : vector<16x32xbf16>, vector<32x32xbf16>, vector<16x32xf32> -> vector<16x32xf32>
    %21 = vector.broadcast %8 : vector<1x32xf32> to vector<16x32xf32>
    %22 = arith.addf %20, %21 : vector<16x32xf32>
    %c0_22 = arith.constant 0 : index
    %c0_23 = arith.constant 0 : index
    %23 = vector.load %arg3[%c0_22, %c0_23] : memref<32x32xf32, #tpu.memory_space<vmem>>, vector<32x32xf32>
    %24 = arith.truncf %23 : vector<32x32xf32> to vector<32x32xbf16>
    %cst_24 = arith.constant dense<0.000000e+00> : vector<32x64xf32>
    %25 = tpu.matmul %24, %1, %cst_24 {dimension_numbers = #tpu.dot_dimension_numbers<[1], [0], [0], [1], [0, 0, 1, 1], [], []>} : vector<32x32xbf16>, vector<32x64xbf16>, vector<32x64xf32> -> vector<32x64xf32>
    %26 = vector.broadcast %9 : vector<1x64xf32> to vector<32x64xf32>
    %27 = arith.addf %25, %26 : vector<32x64xf32>
    %28 = vector.shape_cast %27 : vector<32x64xf32> to vector<2x16x64xf32>
    "tpu.trace_start"() <{level = 10 : i32, message = "bsn,bnc->bsc"}> : () -> ()
    %cst_25 = arith.constant dense<0.000000e+00> : vector<2x64x64xf32>
    %29 = tpu.matmul %18, %28, %cst_25 {dimension_numbers = #tpu.dot_dimension_numbers<[2], [1], [1], [2], [0, 0, 0, 1, 1, 2], [0], [0]>} : vector<2x64x16xf32>, vector<2x16x64xf32>, vector<2x64x64xf32> -> vector<2x64x64xf32>
    "tpu.trace_stop"() : () -> ()
    %30 = vector.shape_cast %29 : vector<2x64x64xf32> to vector<128x64xf32>
    %c0_26 = arith.constant 0 : index
    %c0_27 = arith.constant 0 : index
    %c0_28 = arith.constant 0 : index
    %31 = vector.load %arg4[%c0_26, %c0_27, %c0_28] : memref<2x16x3xf32, #tpu.memory_space<vmem>>, vector<2x16x3xf32>
    "tpu.trace_start"() <{level = 10 : i32, message = "bsn,bnc->bsc"}> : () -> ()
    %cst_29 = arith.constant dense<0.000000e+00> : vector<2x64x3xf32>
    %32 = tpu.matmul %18, %31, %cst_29 {dimension_numbers = #tpu.dot_dimension_numbers<[2], [1], [1], [2], [0, 0, 0, 1, 1, 2], [0], [0]>} : vector<2x64x16xf32>, vector<2x16x3xf32>, vector<2x64x3xf32> -> vector<2x64x3xf32>
    "tpu.trace_stop"() : () -> ()
    %33 = vector.shape_cast %32 : vector<2x64x3xf32> to vector<128x3xf32>
    %34 = vector.extract_strided_slice %30 {offsets = [0, 0], sizes = [128, 32], strides = [1, 1]} : vector<128x64xf32> to vector<128x32xf32>
    %35 = vector.extract_strided_slice %30 {offsets = [0, 32], sizes = [128, 32], strides = [1, 1]} : vector<128x64xf32> to vector<128x32xf32>
    %c0_30 = arith.constant 0 : index
    %c0_31 = arith.constant 0 : index
    %36 = vector.load %arg2[%c0_30, %c0_31] : memref<16x3xf32, #tpu.memory_space<vmem>>, vector<16x3xf32>
    %37 = vector.shape_cast %36 : vector<16x3xf32> to vector<16x1x3xf32>
    %38 = vector.shape_cast %37 : vector<16x1x3xf32> to vector<16x1x3xf32>
    %39 = vector.broadcast %38 : vector<16x1x3xf32> to vector<16x8x3xf32>
    %40 = vector.shape_cast %39 : vector<16x8x3xf32> to vector<128x3xf32>
    %41 = arith.subf %40, %33 : vector<128x3xf32>
    %42 = arith.truncf %41 : vector<128x3xf32> to vector<128x3xbf16>
    %cst_32 = arith.constant dense<0.000000e+00> : vector<128x32xf32>
    %43 = tpu.matmul %42, %3, %cst_32 {dimension_numbers = #tpu.dot_dimension_numbers<[1], [0], [0], [1], [0, 0, 1, 1], [], []>} : vector<128x3xbf16>, vector<3x32xbf16>, vector<128x32xf32> -> vector<128x32xf32>
    %44 = vector.broadcast %10 : vector<1x32xf32> to vector<128x32xf32>
    %45 = arith.addf %43, %44 : vector<128x32xf32>
    %cst_33 = arith.constant 0.000000e+00 : f32
    %46 = vector.broadcast %cst_33 : f32 to vector<128x32xf32>
    %47 = arith.maximumf %45, %46 : vector<128x32xf32>
    %48 = arith.addf %35, %47 : vector<128x32xf32>
    %49 = vector.shape_cast %22 : vector<16x32xf32> to vector<16x1x32xf32>
    %50 = vector.shape_cast %49 : vector<16x1x32xf32> to vector<16x1x32xf32>
    %51 = vector.broadcast %50 : vector<16x1x32xf32> to vector<16x8x32xf32>
    %52 = vector.shape_cast %51 : vector<16x8x32xf32> to vector<128x32xf32>
    %53 = arith.mulf %52, %34 : vector<128x32xf32>
    %cst_34 = arith.constant dense<0.000000e+00> : vector<128x4xf32>
    %54 = tpu.matmul %53, %7, %cst_34 {dimension_numbers = #tpu.dot_dimension_numbers<[1], [0], [0], [1], [0, 0, 1, 1], [], []>} : vector<128x32xf32>, vector<32x4xf32>, vector<128x4xf32> -> vector<128x4xf32>
    %cst_35 = arith.constant 0.353553385 : f32
    %55 = vector.broadcast %cst_35 : f32 to vector<128x4xf32>
    %56 = arith.mulf %54, %55 : vector<128x4xf32>
    %57 = vector.shape_cast %56 : vector<128x4xf32> to vector<16x8x4xf32>
    %cst_36 = arith.constant dense<0xFF800000> : vector<16x4xf32>
    %58 = vector.multi_reduction <maximumf>, %57, %cst_36 [1] : vector<16x8x4xf32> to vector<16x4xf32>
    %59 = vector.shape_cast %58 : vector<16x4xf32> to vector<16x1x4xf32>
    %60 = vector.broadcast %59 : vector<16x1x4xf32> to vector<16x8x4xf32>
    %61 = arith.subf %57, %60 : vector<16x8x4xf32>
    %62 = math.exp %61 : vector<16x8x4xf32>
    %cst_37 = arith.constant dense<0.000000e+00> : vector<16x4xf32>
    %63 = vector.multi_reduction <add>, %62, %cst_37 [1] : vector<16x8x4xf32> to vector<16x4xf32>
    %64 = vector.shape_cast %63 : vector<16x4xf32> to vector<16x1x4xf32>
    %65 = tpu.reciprocal %64 {approx = true} : vector<16x1x4xf32> -> vector<16x1x4xf32>
    %66 = vector.broadcast %65 : vector<16x1x4xf32> to vector<16x8x4xf32>
    %67 = arith.mulf %62, %66 : vector<16x8x4xf32>
    %68 = vector.shape_cast %67 : vector<16x8x4xf32> to vector<128x4xf32>
    %cst_38 = arith.constant dense<0.000000e+00> : vector<128x32xf32>
    %69 = tpu.matmul %68, %5, %cst_38 {dimension_numbers = #tpu.dot_dimension_numbers<[1], [0], [0], [1], [0, 0, 1, 1], [], []>} : vector<128x4xf32>, vector<4x32xf32>, vector<128x32xf32> -> vector<128x32xf32>
    %70 = arith.mulf %69, %48 : vector<128x32xf32>
    %71 = vector.shape_cast %70 : vector<128x32xf32> to vector<16x8x32xf32>
    %cst_39 = arith.constant dense<0.000000e+00> : vector<16x32xf32>
    %72 = vector.multi_reduction <add>, %71, %cst_39 [1] : vector<16x8x32xf32> to vector<16x32xf32>
    %73 = arith.addf %16, %72 : vector<16x32xf32>
    %cst_40 = arith.constant dense<0.000000e+00> : vector<16xf32>
    %74 = vector.multi_reduction <add>, %73, %cst_40 [1] : vector<16x32xf32> to vector<16xf32>
    %75 = vector.shape_cast %74 : vector<16xf32> to vector<16x1xf32>
    %cst_41 = arith.constant 3.200000e+01 : f32
    %76 = vector.broadcast %cst_41 : f32 to vector<16x1xf32>
    %77 = arith.divf %75, %76 : vector<16x1xf32>
    %78 = vector.broadcast %77 : vector<16x1xf32> to vector<16x32xf32>
    %79 = arith.subf %73, %78 : vector<16x32xf32>
    %80 = arith.mulf %79, %79 : vector<16x32xf32>
    %cst_42 = arith.constant dense<0.000000e+00> : vector<16xf32>
    %81 = vector.multi_reduction <add>, %80, %cst_42 [1] : vector<16x32xf32> to vector<16xf32>
    %82 = vector.shape_cast %81 : vector<16xf32> to vector<16x1xf32>
    %cst_43 = arith.constant 3.200000e+01 : f32
    %83 = vector.broadcast %cst_43 : f32 to vector<16x1xf32>
    %84 = arith.divf %82, %83 : vector<16x1xf32>
    %85 = vector.broadcast %77 : vector<16x1xf32> to vector<16x32xf32>
    %86 = arith.subf %73, %85 : vector<16x32xf32>
    %cst_44 = arith.constant 9.99999974E-6 : f32
    %87 = vector.broadcast %cst_44 : f32 to vector<16x1xf32>
    %88 = arith.addf %84, %87 : vector<16x1xf32>
    %89 = math.rsqrt %88 : vector<16x1xf32>
    %90 = vector.broadcast %89 : vector<16x1xf32> to vector<16x32xf32>
    %91 = arith.mulf %86, %90 : vector<16x32xf32>
    %92 = vector.broadcast %12 : vector<1x32xf32> to vector<16x32xf32>
    %93 = arith.mulf %91, %92 : vector<16x32xf32>
    %94 = vector.broadcast %13 : vector<1x32xf32> to vector<16x32xf32>
    %95 = arith.addf %93, %94 : vector<16x32xf32>
    %96 = arith.truncf %95 : vector<16x32xf32> to vector<16x32xbf16>
    %cst_45 = arith.constant dense<0.000000e+00> : vector<16x32xf32>
    %97 = tpu.matmul %96, %2, %cst_45 {dimension_numbers = #tpu.dot_dimension_numbers<[1], [0], [0], [1], [0, 0, 1, 1], [], []>} : vector<16x32xbf16>, vector<32x32xbf16>, vector<16x32xf32> -> vector<16x32xf32>
    %98 = vector.broadcast %11 : vector<1x32xf32> to vector<16x32xf32>
    %99 = arith.addf %97, %98 : vector<16x32xf32>
    %cst_46 = arith.constant dense<0.000000e+00> : vector<16xf32>
    %100 = vector.multi_reduction <add>, %99, %cst_46 [1] : vector<16x32xf32> to vector<16xf32>
    %101 = vector.shape_cast %100 : vector<16xf32> to vector<16x1xf32>
    %cst_47 = arith.constant 3.200000e+01 : f32
    %102 = vector.broadcast %cst_47 : f32 to vector<16x1xf32>
    %103 = arith.divf %101, %102 : vector<16x1xf32>
    %104 = vector.broadcast %103 : vector<16x1xf32> to vector<16x32xf32>
    %105 = arith.subf %99, %104 : vector<16x32xf32>
    %106 = arith.mulf %105, %105 : vector<16x32xf32>
    %cst_48 = arith.constant dense<0.000000e+00> : vector<16xf32>
    %107 = vector.multi_reduction <add>, %106, %cst_48 [1] : vector<16x32xf32> to vector<16xf32>
    %108 = vector.shape_cast %107 : vector<16xf32> to vector<16x1xf32>
    %cst_49 = arith.constant 3.200000e+01 : f32
    %109 = vector.broadcast %cst_49 : f32 to vector<16x1xf32>
    %110 = arith.divf %108, %109 : vector<16x1xf32>
    %111 = vector.broadcast %103 : vector<16x1xf32> to vector<16x32xf32>
    %112 = arith.subf %99, %111 : vector<16x32xf32>
    %cst_50 = arith.constant 9.99999974E-6 : f32
    %113 = vector.broadcast %cst_50 : f32 to vector<16x1xf32>
    %114 = arith.addf %110, %113 : vector<16x1xf32>
    %115 = math.rsqrt %114 : vector<16x1xf32>
    %116 = vector.broadcast %115 : vector<16x1xf32> to vector<16x32xf32>
    %117 = arith.mulf %112, %116 : vector<16x32xf32>
    %118 = vector.broadcast %14 : vector<1x32xf32> to vector<16x32xf32>
    %119 = arith.mulf %117, %118 : vector<16x32xf32>
    %120 = vector.broadcast %15 : vector<1x32xf32> to vector<16x32xf32>
    %121 = arith.addf %119, %120 : vector<16x32xf32>
    %c0_51 = arith.constant 0 : index
    %c0_52 = arith.constant 0 : index
    %122 = vector.load %arg8[%c0_51, %c0_52] : memref<16x32xf32, #tpu.memory_space<vmem>>, vector<16x32xf32>
    tpu.vector_store %arg8[%c0_51, %c0_52], %121 {strides = array<i32>} : memref<16x32xf32, #tpu.memory_space<vmem>>, vector<16x32xf32>,
    return
  }
  func.func @transform_0(%arg0: i32) -> (i32, i32) {
    %c0_i32 = arith.constant 0 : i32
    %c0_i32_0 = arith.constant 0 : i32
    return %arg0, %c0_i32 : i32, i32
  }
  func.func @transform_1(%arg0: i32) -> (i32, i32) {
    %c0_i32 = arith.constant 0 : i32
    %c0_i32_0 = arith.constant 0 : i32
    return %arg0, %c0_i32 : i32, i32
  }
  func.func @transform_2(%arg0: i32) -> (i32, i32) {
    %c0_i32 = arith.constant 0 : i32
    %c0_i32_0 = arith.constant 0 : i32
    return %arg0, %c0_i32 : i32, i32
  }
  func.func @transform_3(%arg0: i32) -> (i32, i32, i32) {
    %c0_i32 = arith.constant 0 : i32
    %c0_i32_0 = arith.constant 0 : i32
    %c0_i32_1 = arith.constant 0 : i32
    return %arg0, %c0_i32, %c0_i32_0 : i32, i32, i32
  }
  func.func @transform_4(%arg0: i32) -> (i32, i32, i32) {
    %c0_i32 = arith.constant 0 : i32
    %c0_i32_0 = arith.constant 0 : i32
    %c0_i32_1 = arith.constant 0 : i32
    return %arg0, %c0_i32, %c0_i32_0 : i32, i32, i32
  }
  func.func @transform_5(%arg0: i32) -> (i32, i32) {
    %c0_i32 = arith.constant 0 : i32
    %c0_i32_0 = arith.constant 0 : i32
    %c0_i32_1 = arith.constant 0 : i32
    return %c0_i32, %c0_i32_0 : i32, i32
  }
  func.func @transform_6(%arg0: i32) -> (i32, i32) {
    %c0_i32 = arith.constant 0 : i32
    %c0_i32_0 = arith.constant 0 : i32
    %c0_i32_1 = arith.constant 0 : i32
    return %c0_i32, %c0_i32_0 : i32, i32
  }
  func.func @transform_7(%arg0: i32) -> (i32, i32) {
    %c0_i32 = arith.constant 0 : i32
    %c0_i32_0 = arith.constant 0 : i32
    return %arg0, %c0_i32 : i32, i32
  }
}

</mosaic_0001>

<bundles_post_ra>
// kernel: eq.1
= control target key start
LH: loop header
LB: loop body
LE: loop exit
PB: predicated region body
PF: predicated region fallthrough
CT: control target
= control target key end

     0   :  { %2 = vsyncpa [#allocation1], 0  ;;  %s108_s8 = smov [#allocation0]   ;;  %s132_s0 = inlined_call_operand.hbm [shape: s32[2,8,8], index: 0, kind: input, shape index: {}]   ;;  %s133_s1 = inlined_call_operand.vmem [shape: s32[2,64], index: 1, kind: output, shape index: {}]  }
   0x1   :  { %s6_s0 = sshll.u32 %s132_s0, 4  ;;  %s8_s9 = sshll.u32 %s108_s8, 4  ;;  %s7_s0 = int_to_ptr.hbm [resolvable:$true] %s6_s0  ;;  %s9_s9 = int_to_ptr.vmem [resolvable:$true] %s8_s9 }
   0x2   :  { %11 = dma.hbm_to_vmem [thread:$0]  %s7_s0, 256, %s9_s9, [#allocation1]  }
   0x3   :  { %106 = dma.done.wait [#allocation1], 256  }
   0x4   :  { %107 = vsyncadd [#allocation1], 4294967040  ;;  %s19_s10 = smov 3  ;;  %s33_s11 = smov 3  ;;  %vm16_vm0 = vcmask 64512   ;;  %vm23_vm1 = vcmask 523712  }
   0x5   :  { %s47_s12 = smov 3  ;;  %v20_v0 = vld [vmem:[#allocation0 + $0x7] ss:$8 sm:%s19_s10]   ;;  %v34_v1 = vld [vmem:[#allocation0 + $0x5] ss:$8 sm:%s33_s11]   ;;  %s109_s13 = smov 56  }
   0x6   :  { %21 = vrot.lane.b32.xlu0 %v20_v0, %s109_s13  ;;  %s110_s14 = smov 40   ;;  %v48_v2 = vld [vmem:[#allocation0 + $0x3] ss:$8 sm:%s47_s12]   ;;  %s26_s15 = smov 3  ;;  %vm30_vm2 = vcmask 458112   ;;  %vm37_vm3 = vcmask 392512  }
   0x7   :  { %35 = vrot.lane.b32.xlu1 %v34_v1, %s110_s14  ;;  %s40_s16 = smov 3  ;;  %s111_s17 = smov 24   ;;  %v27_v3 = vld [vmem:[#allocation0 + $0x6] ss:$8 sm:%s26_s15]   ;;  %vm44_vm4 = vcmask 326912   ;;  %vm51_vm5 = vcmask 261312  }
   0x8   :  { %49 = vrot.lane.b32.xlu2 %v48_v2, %s111_s17  ;;  %s54_s18 = smov 3  ;;  %v41_v4 = vld [vmem:[#allocation0 + $0x4] ss:$8 sm:%s40_s16]   ;;  %s112_s19 = smov 48   ;;  %vm58_vm6 = vcmask 195712   ;;  %vm65_vm7 = vcmask 130112  }
   0x9   :  { %v55_v5 = vld [vmem:[#allocation0 + $0x2] ss:$8 sm:%s54_s18]   ;;  %s113_s20 = smov 32   ;;  %s61_s21 = smov 3 }
   0xa   :  { %s114_s22 = smov 16   ;;  %v62_v6 = vld [vmem:[#allocation0 + $0x1] ss:$8 sm:%s61_s21]   ;;  %s115_s23 = smov 8  }
   0xb   :  { %s14_s24 = smov 3 }
   0xc   :  { %v15_v7 = vld [vmem:[#allocation0] ss:$8 sm:%s14_s24]  }
   0xd   :  { %17 = vst.msk [vmem:[#allocation2] sm:$0x3] %vm16_vm0, %v15_v7  }
   0xe   :  { %28 = vrot.lane.b32.xlu0 %v27_v3, %s112_s19 }
   0xf   :  { %42 = vrot.lane.b32.xlu1 %v41_v4, %s113_s20 }
  0x10   :  { %56 = vrot.lane.b32.xlu2 %v55_v5, %s114_s22 }
  0x16   :  { %63 = vrot.lane.b32.xlu0 %v62_v6, %s115_s23 }
  0x62   :  { %v50_v8 = vpop.permute.xlu2 %49  }
  0x6a   :  { %v57_v9 = vpop.permute.xlu2 %56  }
  0x78   :  { %v22_v10 = vpop.permute.xlu0 %21  }
  0x79   :  { %v36_v11 = vpop.permute.xlu1 %35   ;;  %24 = vst.msk [vmem:[#allocation2] sm:$0x3] %vm23_vm1, %v22_v10  }
  0x80   :  { %v29_v12 = vpop.permute.xlu0 %28  }
  0x81   :  { %v43_v13 = vpop.permute.xlu1 %42   ;;  %31 = vst.msk [vmem:[#allocation2] sm:$0x3] %vm30_vm2, %v29_v12  }
  0x82   :  { %38 = vst.msk [vmem:[#allocation2] sm:$0x3] %vm37_vm3, %v36_v11  }
  0x83   :  { %45 = vst.msk [vmem:[#allocation2] sm:$0x3] %vm44_vm4, %v43_v13  }
  0x84   :  { %52 = vst.msk [vmem:[#allocation2] sm:$0x3] %vm51_vm5, %v50_v8  }
  0x85   :  { %59 = vst.msk [vmem:[#allocation2] sm:$0x3] %vm58_vm6, %v57_v9  }
  0x88   :  { %v64_v14 = vpop.permute.xlu0 %63  }
  0x89   :  { %66 = vst.msk [vmem:[#allocation2] sm:$0x3] %vm65_vm7, %v64_v14  }
  0x90   :  { %v69_v15 = vld [vmem:[#allocation2] sm:$0x3] }
  0x91   :  { %72 = vst [vmem:[%s133_s1] sm:$0x3] %v69_v15 }
  0x92   :  { %73 = vsyncpa [#allocation1], 1 }

// kernel: _forward.1
= control target key start
LH: loop header
LB: loop body
LE: loop exit
PB: predicated region body
PF: predicated region fallthrough
CT: control target
= control target key end

     0   :  { %s1881_s26 = smov 96   ;;  %s2411_s0 = inlined_call_operand.vmem [shape: f32[16,32], index: 0, kind: input, shape index: {}]   ;;  %s2412_s1 = inlined_call_operand.vmem [shape: f32[16,3], index: 1, kind: input, shape index: {}]   ;;  %s2413_s2 = inlined_call_operand.vmem [shape: f32[32,32], index: 2, kind: input, shape index: {}]   ;;  %s2414_s3 = inlined_call_operand.vmem [shape: f32[2,16,3], index: 3, kind: input, shape index: {}]   ;;  %s2415_s4 = inlined_call_operand.vmem [shape: bf16[2,64,16], index: 4, kind: input, shape index: {}]   ;;  %s2416_s5 = inlined_call_operand.vmem [shape: bf16[72,128], index: 5, kind: input, shape index: {}]   ;;  %s2417_s6 = inlined_call_operand.vmem [shape: f32[8,128], index: 6, kind: input, shape index: {}]   ;;  %s2418_s7 = inlined_call_operand.hbm [shape: f32[16,32], index: 7, kind: output, shape index: {}]  }
   0x1   :  { %v1711_v0 = vld [vmem:[%s2416_s5 + $0x8] sm:$0xff] }
   0x2   :  { %125 = vrot.lane.b32.xlu0 %v1711_v0, %s1881_s26  ;;  %108 = vmatpush.bf16.msra.mxu0 %v1711_v0 }
   0x3   :  { %12 = vsyncpa [#allocation3], 0  ;;  %v1710_v1 = vld [vmem:[%s2416_s5] sm:$0xff]  ;;  %v51_v3 = vld [vmem:[%s2411_s0 + $0x8] sm:$0xff]  ;;  %vm98_vm0 = vcmask 261120   ;;  %vm154_vm1 = vcmask 130048  }
   0x4   :  { %v50_v2 = vld [vmem:[%s2411_s0] sm:$0xff]  ;;  %v117_v7 = vld [vmem:[%s2413_s2 + $0x8] sm:$0xff]  ;;  %v118_v10 = vld [vmem:[%s2413_s2 + $0x10] sm:$0xff]  ;;  %vm471_vm2 = vcmask 1040384   ;;  %vm472_vm3 = vcmask 1041408   ;;  %v1882_v62 = vmov 65535  }
   0x5   :  { %v84_v4 = vpack.c.bf16 %v51_v3, %v50_v2  ;;  %v116_v6 = vld [vmem:[%s2413_s2] sm:$0xff]  ;;  %v119_v11 = vld [vmem:[%s2413_s2 + $0x18] sm:$0xff]  ;;  %v286_v14 = vld [vmem:[%s2414_s3 + $0x8] sm:$0xff]  ;;  %v473_v63 = vsel %vm471_vm2, 4294967295, %v1882_v62  ;;  %vm446_vm4 = vcmask 23552   ;;  %vm816_vm5 = vcmask 31744  }
   0x6   :  { %109 = vmatpush.bf16.msra.mxu0 %v1710_v1  ;;  %v120_v9 = vpack.c.bf16 %v117_v7, %v116_v6  ;;  %v121_v12 = vpack.c.bf16 %v119_v11, %v118_v10  ;;  %v1717_v13 = vld [vmem:[%s2415_s4] sm:$0xff]   ;;  %v1749_v18 = vld [vmem:[%s2415_s4 + $0x8] sm:$0xff]   ;;  %v1750_v27 = vld [vmem:[%s2415_s4 + $0x10] sm:$0xff]   ;;  %v474_v0 = vsel %vm472_vm3, %v473_v63, 0  ;;  %vm1172_vm6 = vcmask 1043456   ;;  %s1883_s11 = smov 32  }
   0x7   :  { %v1719_v15 = vunpack.c.h.bf16 %v1717_v13  ;;  %v285_v16 = vld [vmem:[%s2414_s3] sm:$0xff]  ;;  %v1722_v19 = vunpack.c.l.bf16 %v1749_v18  ;;  %v1718_v23 = vunpack.c.l.bf16 %v1717_v13  ;;  %v1723_v25 = vunpack.c.h.bf16 %v1749_v18  ;;  %v1753_v36 = vld [vmem:[%s2415_s4 + $0x28] sm:$0xff]   ;;  %v1751_v38 = vld [vmem:[%s2415_s4 + $0x18] sm:$0xff]   ;;  %s1613_s29 = sshll.u32 %s2418_s7, 4  ;;  %s1887_s30 = smov 8   ;;  %s1614_s29 = int_to_ptr.hbm [resolvable:$true] %s1613_s29 }
   0x8   :  { %v1769_v20 = vld [vmem:[%s2417_s6 + $0x1] ss:$0 sm:$0xff]  ;;  %v1726_v28 = vunpack.c.l.bf16 %v1750_v27  ;;  %v1727_v35 = vunpack.c.h.bf16 %v1750_v27  ;;  %v1738_v37 = vunpack.c.l.bf16 %v1753_v36  ;;  %v1730_v39 = vunpack.c.l.bf16 %v1751_v38  ;;  %v288_v42 = vld [vmem:[%s2414_s3 + $0x18] sm:$0xff]  ;;  %v1754_v43 = vld [vmem:[%s2415_s4 + $0x30] sm:$0xff]  }
   0x9   :  { %1633 = vmatmul.msk.bf16.vlgmr.msra.gmra.mxu0 %vm98_vm0, %v84_v4  ;;  %v1752_v29 = vld [vmem:[%s2415_s4 + $0x20] sm:$0xff]   ;;  %v1739_v40 = vunpack.c.h.bf16 %v1753_v36  ;;  %v1731_v41 = vunpack.c.h.bf16 %v1751_v38  ;;  %v287_v44 = vld [vmem:[%s2414_s3 + $0x10] sm:$0xff]  ;;  %v1742_v45 = vunpack.c.l.bf16 %v1754_v43  ;;  %v1743_v47 = vunpack.c.h.bf16 %v1754_v43  ;;  %v1755_v49 = vld [vmem:[%s2415_s4 + $0x38] sm:$0xff]   ;;  %s1885_s4 = smov [#allocation2]  }
   0xa   :  { %123 = vrot.lane.b32.xlu0 %v1710_v1, %s1881_s26  ;;  %v1734_v32 = vunpack.c.l.bf16 %v1752_v29  ;;  %v1735_v34 = vunpack.c.h.bf16 %v1752_v29  ;;  %v1770_v48 = vld [vmem:[%s2417_s6] ss:$0 sm:$0xff]  ;;  %v1746_v52 = vunpack.c.l.bf16 %v1755_v49  ;;  %v1748_v54 = vld [vmem:[%s2416_s5 + $0x18] sm:$0xff]   ;;  %v1747_v57 = vunpack.c.h.bf16 %v1755_v49  ;;  %v34_v59 = vld [vmem:[%s2416_s5 + $0x14] sm:$0xf]  ;;  %s1611_s25 = sshll.u32 %s1885_s4, 4  ;;  %s1612_s25 = int_to_ptr.vmem [resolvable:$true] %s1611_s25 }
   0xb   :  { %v37_v53 = vld [vmem:[%s2416_s5 + $0x20] sm:$0xf]  ;;  %v1715_v56 = vunpack.c.h.bf16 %v1748_v54  ;;  %v1714_v58 = vunpack.c.l.bf16 %v1748_v54  ;;  %v38_v60 = vunpack.c.l.bf16 %v34_v59  ;;  %v32_v61 = vld [vmem:[%s2416_s5 + $0x10] sm:$0x3]  ;;  %vm1448_vm7 = vcmask 1041409  }
   0xc   :  { %v41_v55 = vunpack.c.l.bf16 %v37_v53  ;;  %v476_v1 = vand.u32 %v474_v0, %v32_v61  ;;  %v2061_v13 = vld [vmem:[%s2412_s1] sm:$0xff]  ;;  %vm1450_vm8 = vcmask 1042434   ;;  %vm1452_vm9 = vcmask 1043459  }
   0xd   :  { %v379_v54 = vrot.slane %v2061_v13, 5  ;;  %vm1454_vm10 = vcmask 1044484   ;;  %vm1456_vm11 = vcmask 1045509   ;;  %vm1458_vm12 = vcmask 1046534  }
   0xe   :  { %vm1460_vm13 = vcmask 1047559  }
  0x74   :  { %v126_v5 = vpop.permute.xlu0 %125 }
  0x75   :  { %141 = vmatpush.bf16.msra.mxu1 %v126_v5 }
  0x7c   :  { %v124_v8 = vpop.permute.xlu0 %123 }
  0x7d   :  { %142 = vmatpush.bf16.msra.mxu1 %v124_v8 }
  0x80   :  { %1634 = vmatmul.msk.bf16.vlgmr.msra.gmra.mxu1 %vm98_vm0, %v120_v9 }
  0x81   :  { %1760 = vmatpush.msrb.mxu1 %v286_v14 }
  0x83   :  { %1761 = vmatpush.msrb.mxu1 %v285_v16 }
  0x85   :  { %344 = vmatpush.msra.mxu1 %v288_v42 }
  0x86   :  { %v111_v46 = vpop.f32.mrf.mxu0 }
  0x87   :  { %345 = vmatpush.msra.mxu1 %v287_v44  ;;  %v2045_v3 = vadd.f32 %v1770_v48, %v111_v46 }
  0x89   :  { %v639_v4 = vperm.slane %v2045_v3, 0  ;;  %v625_v8 = vrot.slane %v2045_v3, 1  ;;  %v630_v49 = vrot.slane %v2045_v3, 6 }
  0x8b   :  { %v640_v10 = vperm.slane %v625_v8, 0  ;;  %v645_v53 = vperm.slane %v630_v49, 0 }
  0x8e   :  { %v113_v50 = vpop.f32.mrf.mxu0 }
  0x8f   :  { %v2023_v51 = vadd.f32 %v1770_v48, %v113_v50 }
  0x90   :  { %1635 = vmatmul.msk.bf16.gmra.mxu1 %vm98_vm0, %v121_v12  ;;  %v626_v12 = vrot.slane %v2045_v3, 2 }
  0xa0   :  { %1653 = vmatmul.msk.f32.vlgmr.msrb.gmra.mxu1 %vm154_vm1, %v1719_v15 }
  0xa8   :  { %1654 = vmatmul.msk.f32.gmra.mxu1 %vm154_vm1, %v1722_v19 }
  0xb0   :  { %1655 = vmatmul.msk.f32.gmra.mxu1 %vm154_vm1, %v1723_v25 }
  0xb8   :  { %1656 = vmatmul.msk.f32.gmra.mxu1 %vm154_vm1, %v1726_v28 }
  0xc0   :  { %1657 = vmatmul.msk.f32.gmra.mxu1 %vm154_vm1, %v1727_v35 }
  0xc8   :  { %1658 = vmatmul.msk.f32.gmra.mxu1 %vm154_vm1, %v1730_v39 }
  0xd0   :  { %1659 = vmatmul.msk.f32.gmra.mxu1 %vm154_vm1, %v1731_v41 }
  0xd8   :  { %1660 = vmatmul.msk.f32.vlgmr.msra.gmra.mxu1 %vm154_vm1, %v1734_v32 }
  0xe0   :  { %1661 = vmatmul.msk.f32.gmra.mxu1 %vm154_vm1, %v1735_v34 }
  0xe8   :  { %1662 = vmatmul.msk.f32.gmra.mxu1 %vm154_vm1, %v1738_v37 }
  0xf0   :  { %1663 = vmatmul.msk.f32.gmra.mxu1 %vm154_vm1, %v1739_v40 }
  0xf8   :  { %1664 = vmatmul.msk.f32.gmra.mxu1 %vm154_vm1, %v1742_v45 }
  0xfd   :  { %v144_v17 = vpop.f32.mrf.mxu1 }
  0xfe   :  { %v145_v24 = vadd.f32 %v1769_v20, %v144_v17  ;;  %v375_v17 = vrot.slane %v2061_v13, 1 }
 0x100   :  { %1665 = vmatmul.msk.f32.gmra.mxu1 %vm154_vm1, %v1743_v47 }
 0x105   :  { %v146_v21 = vpop.f32.mrf.mxu1 }
 0x106   :  { %v147_v22 = vadd.f32 %v1769_v20, %v146_v21  ;;  %v627_v21 = vrot.slane %v2045_v3, 3 }
 0x108   :  { %193 = vmatpush.msrb.mxu0 %v147_v22  ;;  %1756 = vmatpush.msra.mxu2 %v147_v22  ;;  %v389_v22 = vperm.slane %v2061_v13, 0 }
 0x109   :  { %1666 = vmatmul.msk.f32.gmra.mxu1 %vm154_vm1, %v1746_v52 }
 0x10a   :  { %194 = vmatpush.msrb.mxu0 %v145_v24  ;;  %1757 = vmatpush.msra.mxu2 %v145_v24 }
 0x10b   :  { %1636 = vmatmul.msk.f32.vlgmr.msrb.gmra.mxu0 %vm154_vm1, %v1718_v23  ;;  %1637 = vmatmul.msk.f32.vlgmr.msra.gmra.mxu2 %vm154_vm1, %v1719_v15 }
 0x10c   :  { %485 = vmatpush.bf16.msrb.mxu2 %v476_v1 }
 0x10d   :  { %v149_v26 = vpop.f32.mrf.mxu1 }
 0x10e   :  { %v150_v33 = vadd.f32 %v1769_v20, %v149_v26  ;;  %v642_v26 = vperm.slane %v627_v21, 0 }
 0x111   :  { %1667 = vmatmul.msk.f32.gmra.mxu1 %vm154_vm1, %v1747_v57 }
 0x113   :  { %1638 = vmatmul.msk.f32.gmra.mxu2 %vm154_vm1, %v1722_v19 }
 0x115   :  { %v151_v30 = vpop.f32.mrf.mxu1 }
 0x116   :  { %v152_v31 = vadd.f32 %v1769_v20, %v151_v30  ;;  %v390_v20 = vperm.slane %v375_v17, 0 }
 0x118   :  { %258 = vmatpush.msra.mxu0 %v152_v31  ;;  %1758 = vmatpush.msra.mxu3 %v152_v31  ;;  %v628_v31 = vrot.slane %v2045_v3, 4 }
 0x11a   :  { %259 = vmatpush.msra.mxu0 %v150_v33  ;;  %1759 = vmatpush.msra.mxu3 %v150_v33  ;;  %v376_v33 = vrot.slane %v2061_v13, 2 }
 0x11b   :  { %1639 = vmatmul.msk.f32.gmra.mxu2 %vm154_vm1, %v1723_v25  ;;  %1644 = vmatmul.msk.f32.vlgmr.msra.gmra.mxu0 %vm154_vm1, %v1734_v32 }
 0x11c   :  { %1645 = vmatmul.msk.f32.vlgmr.msra.gmra.mxu3 %vm154_vm1, %v1735_v34  ;;  %303 = vmatpush.msrb.mxu0 %v286_v14  ;;  %v643_v34 = vperm.slane %v628_v31, 0 }
 0x11d   :  { %747 = vmatpush.msrb.mxu3 %v41_v55  ;;  %v309_v2 = vpop.f32.mrf.mxu1 }
 0x11e   :  { %304 = vmatpush.msrb.mxu0 %v285_v16  ;;  %v641_v16 = vperm.slane %v626_v12, 0  ;;  %v422_v25 = vsub.f32 %v390_v20, %v309_v2 }
 0x11f   :  { %748 = vmatpush.msrb.mxu3 %v1715_v56 }
 0x121   :  { %749 = vmatpush.msrb.mxu3 %v1714_v58  ;;  %v631_v58 = vrot.slane %v2045_v3, 7 }
 0x123   :  { %1640 = vmatmul.msk.f32.gmra.mxu2 %vm154_vm1, %v1726_v28  ;;  %1652 = vmatmul.msk.f32.vlgmr.msrb.gmra.mxu0 %vm154_vm1, %v1718_v23  ;;  %v646_v63 = vperm.slane %v631_v58, 0  ;;  %v637_v58 = vrot.slane %v2023_v51, 6 }
 0x124   :  { %1646 = vmatmul.msk.f32.gmra.mxu3 %vm154_vm1, %v1738_v37  ;;  %v33_v37 = vunpack.c.l.bf16 %v32_v61 }
 0x125   :  { %750 = vmatpush.msrb.mxu3 %v38_v60  ;;  %v312_v7 = vpop.f32.mrf.mxu1 }
 0x126   :  { %1122 = vrot.lane.b32.xlu1 %v33_v37, %s1881_s26 }
 0x12b   :  { %1641 = vmatmul.msk.f32.gmra.mxu2 %vm154_vm1, %v1727_v35  ;;  %v377_v35 = vrot.slane %v2061_v13, 3 }
 0x12c   :  { %1647 = vmatmul.msk.f32.gmra.mxu3 %vm154_vm1, %v1739_v40 }
 0x12d   :  { %v315_v14 = vpop.f32.mrf.mxu1  ;;  %v392_v40 = vperm.slane %v377_v35, 0 }
 0x12f   :  { %v424_v44 = vsub.f32 %v392_v40, %v315_v14 }
 0x133   :  { %1642 = vmatmul.msk.f32.gmra.mxu2 %vm154_vm1, %v1730_v39  ;;  %v391_v39 = vperm.slane %v376_v33, 0 }
 0x134   :  { %1648 = vmatmul.msk.f32.gmra.mxu3 %vm154_vm1, %v1742_v45 }
 0x135   :  { %v318_v24 = vpop.f32.mrf.mxu1  ;;  %v423_v43 = vsub.f32 %v391_v39, %v312_v7  ;;  %v381_v7 = vrot.slane %v2061_v13, 7  ;;  %v635_v39 = vrot.slane %v2023_v51, 4 }
 0x137   :  { %v438_v48 = vpack.c.bf16 %v424_v44, %v423_v43  ;;  %v396_v12 = vperm.slane %v381_v7, 0  ;;  %v651_v43 = vperm.slane %v635_v39, 0 }
 0x13b   :  { %1643 = vmatmul.msk.f32.gmra.mxu2 %vm154_vm1, %v1731_v41  ;;  %v629_v41 = vrot.slane %v2045_v3, 5  ;;  %v380_v3 = vrot.slane %v2061_v13, 6 }
 0x13c   :  { %1649 = vmatmul.msk.f32.gmra.mxu3 %vm154_vm1, %v1743_v47 }
 0x13d   :  { %v321_v36 = vpop.f32.mrf.mxu1  ;;  %v644_v45 = vperm.slane %v629_v41, 0 }
 0x144   :  { %1650 = vmatmul.msk.f32.gmra.mxu3 %vm154_vm1, %v1746_v52  ;;  %v378_v52 = vrot.slane %v2061_v13, 4  ;;  %v372_v13 = vld [vmem:[%s2412_s1 + $0x8] sm:$0xff] }
 0x145   :  { %v324_v47 = vpop.f32.mrf.mxu1  ;;  %v397_v31 = vperm.slane %v372_v13, 0  ;;  %v383_v44 = vrot.slane %v372_v13, 2 }
 0x146   :  { %v393_v56 = vperm.slane %v378_v52, 0 }
 0x147   :  { %v399_v49 = vperm.slane %v383_v44, 0 }
 0x148   :  { %v425_v61 = vsub.f32 %v393_v56, %v318_v24 }
 0x14c   :  { %1651 = vmatmul.msk.f32.gmra.mxu3 %vm154_vm1, %v1747_v57  ;;  %v394_v57 = vperm.slane %v379_v54, 0 }
 0x14d   :  { %v327_v59 = vpop.f32.mrf.mxu1 }
 0x14e   :  { %v426_v62 = vsub.f32 %v394_v57, %v321_v36 }
 0x150   :  { %v439_v2 = vpack.c.bf16 %v426_v62, %v425_v61  ;;  %v653_v62 = vperm.slane %v637_v58, 0 }
 0x188   :  { %v2048_v5 = vpop.f32.mrf.mxu0 }
 0x189   :  { %v671_v6 = vmul.f32 %v639_v4, %v2048_v5  ;;  %v347_v4 = vpop.f32.mrf.mxu1 }
 0x18a   :  { %v429_v35 = vsub.f32 %v397_v31, %v347_v4 }
 0x18b   :  { %1676 = vmatmul.msk.f32.vlgmr.msrb.gmra.mxu3 %vm98_vm0, %v671_v6  ;;  %v647_v6 = vperm.slane %v2023_v51, 0 }
 0x18e   :  { %v2053_v9 = vpop.f32.mrf.mxu2 }
 0x18f   :  { %v672_v11 = vmul.f32 %v640_v10, %v2053_v9  ;;  %v632_v10 = vrot.slane %v2023_v51, 1 }
 0x191   :  { %v350_v20 = vpop.f32.mrf.mxu1 }
 0x193   :  { %1677 = vmatmul.msk.f32.gmra.mxu3 %vm98_vm0, %v672_v11  ;;  %v395_v11 = vperm.slane %v380_v3, 0 }
 0x195   :  { %v427_v17 = vsub.f32 %v395_v11, %v324_v47 }
 0x196   :  { %v2063_v15 = vpop.f32.mrf.mxu2 }
 0x197   :  { %v673_v19 = vmul.f32 %v641_v16, %v2063_v15  ;;  %v648_v16 = vperm.slane %v632_v10, 0 }
 0x198   :  { %v2066_v18 = vpop.f32.mrf.mxu0 }
 0x199   :  { %v679_v8 = vmul.f32 %v647_v6, %v2066_v18  ;;  %v638_v6 = vrot.slane %v2023_v51, 7 }
 0x19b   :  { %1678 = vmatmul.msk.f32.gmra.mxu3 %vm98_vm0, %v673_v19  ;;  %v428_v19 = vsub.f32 %v396_v12, %v327_v59  ;;  %v654_v10 = vperm.slane %v638_v6, 0 }
 0x19d   :  { %v440_v24 = vpack.c.bf16 %v428_v19, %v427_v17 }
 0x19e   :  { %v2072_v23 = vpop.f32.mrf.mxu2 }
 0x19f   :  { %v674_v28 = vmul.f32 %v642_v26, %v2072_v23  ;;  %v2102_v1 = vpop.f32.mrf.mxu3 }
 0x1a0   :  { %v306_v27 = vpop.f32.mrf.mxu0  ;;  %v680_v21 = vmul.f32 %v648_v16, %v2102_v1 }
 0x1a1   :  { %v421_v29 = vsub.f32 %v389_v22, %v306_v27  ;;  %v633_v22 = vrot.slane %v2023_v51, 2  ;;  %v382_v27 = vrot.slane %v372_v13, 1 }
 0x1a3   :  { %v437_v30 = vpack.c.bf16 %v422_v25, %v421_v29  ;;  %1679 = vmatmul.msk.f32.gmra.mxu3 %vm98_vm0, %v674_v28  ;;  %v649_v26 = vperm.slane %v633_v22, 0  ;;  %v353_v29 = vpop.f32.mrf.mxu1  ;;  %v398_v33 = vperm.slane %v382_v27, 0 }
 0x1a5   :  { %1668 = vmatmul.msk.bf16.vlgmr.msrb.gmra.mxu2 %vm446_vm4, %v437_v30  ;;  %v634_v30 = vrot.slane %v2023_v51, 3  ;;  %v430_v36 = vsub.f32 %v398_v33, %v350_v20  ;;  %v387_v20 = vrot.slane %v372_v13, 6 }
 0x1a6   :  { %v2078_v32 = vpop.f32.mrf.mxu2 }
 0x1a7   :  { %v675_v38 = vmul.f32 %v643_v34, %v2078_v32  ;;  %v2112_v14 = vpop.f32.mrf.mxu3  ;;  %v650_v34 = vperm.slane %v634_v30, 0  ;;  %v441_v40 = vpack.c.bf16 %v430_v36, %v429_v35 }
 0x1a8   :  { %v681_v28 = vmul.f32 %v649_v26, %v2112_v14 }
 0x1ab   :  { %1680 = vmatmul.msk.f32.gmra.mxu3 %vm98_vm0, %v675_v38  ;;  %v356_v41 = vpop.f32.mrf.mxu1 }
 0x1ae   :  { %v2086_v42 = vpop.f32.mrf.mxu2 }
 0x1af   :  { %v676_v46 = vmul.f32 %v644_v45, %v2086_v42  ;;  %v2121_v25 = vpop.f32.mrf.mxu3  ;;  %v384_v45 = vrot.slane %v372_v13, 3 }
 0x1b0   :  { %v682_v38 = vmul.f32 %v650_v34, %v2121_v25 }
 0x1b1   :  { %v400_v52 = vperm.slane %v384_v45, 0 }
 0x1b3   :  { %1681 = vmatmul.msk.f32.gmra.mxu3 %vm98_vm0, %v676_v46  ;;  %v432_v56 = vsub.f32 %v400_v52, %v356_v41 }
 0x1b5   :  { %1669 = vmatmul.msk.bf16.gmra.mxu2 %vm446_vm4, %v438_v48  ;;  %v636_v48 = vrot.slane %v2023_v51, 5  ;;  %v403_v51 = vperm.slane %v387_v20, 0 }
 0x1b6   :  { %v2092_v50 = vpop.f32.mrf.mxu2 }
 0x1b7   :  { %v677_v55 = vmul.f32 %v645_v53, %v2092_v50  ;;  %v2126_v37 = vpop.f32.mrf.mxu3  ;;  %v359_v53 = vpop.f32.mrf.mxu1  ;;  %v652_v54 = vperm.slane %v636_v48, 0 }
 0x1b8   :  { %v683_v46 = vmul.f32 %v651_v43, %v2126_v37 }
 0x1bb   :  { %1682 = vmatmul.msk.f32.gmra.mxu3 %vm98_vm0, %v677_v55  ;;  %v431_v55 = vsub.f32 %v399_v49, %v353_v29  ;;  %v1123_v49 = vpop.permute.xlu1 %1122 }
 0x1bc   :  { %1692 = vmatpush.msk.msra.mxu0 %vm1172_vm6, %v1123_v49 }
 0x1bd   :  { %v442_v59 = vpack.c.bf16 %v432_v56, %v431_v55 }
 0x1be   :  { %v2099_v60 = vpop.f32.mrf.mxu2 }
 0x1bf   :  { %v678_v0 = vmul.f32 %v646_v63, %v2099_v60  ;;  %v2133_v47 = vpop.f32.mrf.mxu3  ;;  %v385_v63 = vrot.slane %v372_v13, 4 }
 0x1c0   :  { %v684_v57 = vmul.f32 %v652_v54, %v2133_v47 }
 0x1c1   :  { %v401_v3 = vperm.slane %v385_v63, 0 }
 0x1c3   :  { %1683 = vmatmul.msk.f32.gmra.mxu3 %vm98_vm0, %v678_v0  ;;  %v386_v0 = vrot.slane %v372_v13, 5  ;;  %v433_v11 = vsub.f32 %v401_v3, %v359_v53 }
 0x1c5   :  { %1670 = vmatmul.msk.bf16.gmra.mxu2 %vm446_vm4, %v439_v2  ;;  %v362_v2 = vpop.f32.mrf.mxu1  ;;  %v402_v7 = vperm.slane %v386_v0, 0 }
 0x1c7   :  { %v2140_v61 = vpop.f32.mrf.mxu3  ;;  %v434_v12 = vsub.f32 %v402_v7, %v362_v2 }
 0x1c8   :  { %v685_v4 = vmul.f32 %v653_v62, %v2140_v61  ;;  %v2158_v62 = vld [vmem:[%s2417_s6 + $0x2] ss:$0 sm:$0xff] }
 0x1c9   :  { %v443_v19 = vpack.c.bf16 %v434_v12, %v433_v11 }
 0x1cb   :  { %1684 = vmatmul.msk.f32.gmra.mxu3 %vm98_vm0, %v679_v8 }
 0x1cd   :  { %v365_v17 = vpop.f32.mrf.mxu1 }
 0x1ce   :  { %v435_v27 = vsub.f32 %v403_v51, %v365_v17 }
 0x1cf   :  { %v2146_v8 = vpop.f32.mrf.mxu3 }
 0x1d0   :  { %v686_v16 = vmul.f32 %v654_v10, %v2146_v8 }
 0x1d3   :  { %1685 = vmatmul.msk.f32.gmra.mxu3 %vm98_vm0, %v680_v21  ;;  %v388_v21 = vrot.slane %v372_v13, 7 }
 0x1d5   :  { %1671 = vmatmul.msk.bf16.gmra.mxu2 %vm446_vm4, %v440_v24  ;;  %v404_v22 = vperm.slane %v388_v21, 0  ;;  %v368_v24 = vpop.f32.mrf.mxu1 }
 0x1db   :  { %1686 = vmatmul.msk.f32.gmra.mxu3 %vm98_vm0, %v681_v28  ;;  %v436_v28 = vsub.f32 %v404_v22, %v368_v24 }
 0x1dd   :  { %v444_v33 = vpack.c.bf16 %v436_v28, %v435_v27 }
 0x1e3   :  { %1687 = vmatmul.msk.f32.gmra.mxu3 %vm98_vm0, %v682_v38 }
 0x1e5   :  { %1672 = vmatmul.msk.bf16.gmra.mxu2 %vm446_vm4, %v441_v40 }
 0x1eb   :  { %1688 = vmatmul.msk.f32.gmra.mxu3 %vm98_vm0, %v683_v46 }
 0x1f3   :  { %1689 = vmatmul.msk.f32.gmra.mxu3 %vm98_vm0, %v684_v57 }
 0x1f5   :  { %1673 = vmatmul.msk.bf16.gmra.mxu2 %vm446_vm4, %v442_v59 }
 0x1fb   :  { %1690 = vmatmul.msk.f32.gmra.mxu3 %vm98_vm0, %v685_v4 }
 0x203   :  { %1691 = vmatmul.msk.f32.gmra.mxu3 %vm98_vm0, %v686_v16 }
 0x205   :  { %1674 = vmatmul.msk.bf16.gmra.mxu2 %vm446_vm4, %v443_v19 }
 0x20e   :  { %v752_v26 = vpop.f32.mrf.mxu3 }
 0x20f   :  { %v800_v29 = vmul.f32 0.35355338, %v752_v26 }
 0x211   :  { %v817_v30 = vsel %vm816_vm5, %v800_v29, -inf }
 0x212   :  { %v818_v31 = vrot.slane %v817_v30, 4 }
 0x214   :  { %v819_v34 = vmax.f32 %v817_v30, %v818_v31 }
 0x215   :  { %1675 = vmatmul.msk.bf16.gmra.mxu2 %vm446_vm4, %v444_v33 }
 0x216   :  { %v820_v35 = vrot.slane %v819_v34, 2  ;;  %v755_v36 = vpop.f32.mrf.mxu3 }
 0x217   :  { %v801_v38 = vmul.f32 0.35355338, %v755_v36 }
 0x218   :  { %v821_v39 = vmax.f32 %v819_v34, %v820_v35 }
 0x219   :  { %v824_v13 = vsel %vm816_vm5, %v801_v38, -inf }
 0x21a   :  { %v822_v40 = vrot.slane %v821_v39, 1  ;;  %v825_v41 = vrot.slane %v824_v13, 4 }
 0x21c   :  { %v823_v43 = vmax.f32 %v821_v39, %v822_v40  ;;  %v826_v44 = vmax.f32 %v824_v13, %v825_v41 }
 0x21e   :  { %v929_v45 = vsub.f32 %v800_v29, %v823_v43  ;;  %v827_v46 = vrot.slane %v826_v44, 2  ;;  %v758_v48 = vpop.f32.mrf.mxu3 }
 0x21f   :  { %v802_v52 = vmul.f32 0.35355338, %v758_v48 }
 0x220   :  { %v945_v53 = vmul.f32 1.442695, %v929_v45  ;;  %v828_v54 = vmax.f32 %v826_v44, %v827_v46 }
 0x221   :  { %v831_v55 = vsel %vm816_vm5, %v802_v52, -inf }
 0x222   :  { %1777 = vpow2.f32 %v945_v53  ;;  %v829_v56 = vrot.slane %v828_v54, 1  ;;  %v832_v57 = vrot.slane %v831_v55, 4 }
 0x224   :  { %v830_v58 = vmax.f32 %v828_v54, %v829_v56  ;;  %v833_v59 = vmax.f32 %v831_v55, %v832_v57 }
 0x226   :  { %v930_v63 = vsub.f32 %v801_v38, %v830_v58  ;;  %v834_v0 = vrot.slane %v833_v59, 2  ;;  %v761_v2 = vpop.f32.mrf.mxu3 }
 0x227   :  { %v803_v4 = vmul.f32 0.35355338, %v761_v2 }
 0x228   :  { %v2160_v6 = vpop.eup %1777  ;;  %v947_v3 = vmul.f32 1.442695, %v930_v63  ;;  %v835_v7 = vmax.f32 %v833_v59, %v834_v0  ;;  %v487_v10 = vpop.f32.mrf.mxu2 }
 0x229   :  { %v977_v11 = vsel %vm816_vm5, %v2160_v6, 0.0  ;;  %v838_v12 = vsel %vm816_vm5, %v803_v4, -inf  ;;  %v488_v16 = vadd.f32 %v2158_v62, %v487_v10 }
 0x22a   :  { %v978_v17 = vrot.slane %v977_v11, 4  ;;  %1779 = vpow2.f32 %v947_v3  ;;  %v836_v19 = vrot.slane %v835_v7, 1  ;;  %v839_v20 = vrot.slane %v838_v12, 4 }
 0x22b   :  { %v527_v21 = vmax.f32 %v488_v16, 0.0 }
 0x22c   :  { %v979_v51 = vadd.f32 %v978_v17, %v977_v11  ;;  %v837_v22 = vmax.f32 %v835_v7, %v836_v19  ;;  %v840_v24 = vmax.f32 %v838_v12, %v839_v20 }
 0x22d   :  { %559 = vrot.lane.b32.xlu1 %v527_v21, %s1883_s11 }
 0x22e   :  { %v980_v26 = vrot.slane %v979_v51, 2  ;;  %v931_v27 = vsub.f32 %v802_v52, %v837_v22  ;;  %v841_v28 = vrot.slane %v840_v24, 2  ;;  %v764_v29 = vpop.f32.mrf.mxu3 }
 0x22f   :  { %v804_v30 = vmul.f32 0.35355338, %v764_v29 }
 0x230   :  { %v2167_v31 = vpop.eup %1779  ;;  %v981_v33 = vadd.f32 %v980_v26, %v979_v51  ;;  %v949_v34 = vmul.f32 1.442695, %v931_v27  ;;  %v842_v35 = vmax.f32 %v840_v24, %v841_v28  ;;  %v489_v36 = vpop.f32.mrf.mxu2 }
 0x231   :  { %v984_v38 = vsel %vm816_vm5, %v2167_v31, 0.0  ;;  %v845_v39 = vsel %vm816_vm5, %v804_v30, -inf  ;;  %v490_v13 = vadd.f32 %v2158_v62, %v489_v36 }
 0x232   :  { %v982_v40 = vrot.slane %v981_v33, 1  ;;  %v985_v41 = vrot.slane %v984_v38, 4  ;;  %1781 = vpow2.f32 %v949_v34  ;;  %v843_v43 = vrot.slane %v842_v35, 1 }
 0x233   :  { %v846_v44 = vrot.slane %v845_v39, 4  ;;  %v528_v45 = vmax.f32 %v490_v13, 0.0 }
 0x234   :  { %v983_v46 = vadd.f32 %v982_v40, %v981_v33  ;;  %v986_v48 = vadd.f32 %v985_v41, %v984_v38  ;;  %v844_v49 = vmax.f32 %v842_v35, %v843_v43 }
 0x235   :  { %v847_v52 = vmax.f32 %v845_v39, %v846_v44  ;;  %561 = vrot.lane.b32.xlu2 %v528_v45, %s1883_s11 }
 0x236   :  { %1783 = vrcp.f32 %v983_v46  ;;  %v987_v53 = vrot.slane %v986_v48, 2  ;;  %v932_v54 = vsub.f32 %v803_v4, %v844_v49  ;;  %v767_v55 = vpop.f32.mrf.mxu3 }
 0x237   :  { %v848_v56 = vrot.slane %v847_v52, 2  ;;  %v805_v57 = vmul.f32 0.35355338, %v767_v55 }
 0x238   :  { %v2174_v58 = vpop.eup %1781  ;;  %v951_v59 = vmul.f32 1.442695, %v932_v54  ;;  %v492_v63 = vpop.f32.mrf.mxu2  ;;  %v988_v0 = vadd.f32 %v987_v53, %v986_v48 }
 0x239   :  { %v991_v2 = vsel %vm816_vm5, %v2174_v58, 0.0  ;;  %v849_v3 = vmax.f32 %v847_v52, %v848_v56  ;;  %v852_v7 = vsel %vm816_vm5, %v805_v57, -inf  ;;  %v493_v10 = vadd.f32 %v2158_v62, %v492_v63 }
 0x23a   :  { %v992_v11 = vrot.slane %v991_v2, 4  ;;  %1785 = vpow2.f32 %v951_v59  ;;  %v853_v12 = vrot.slane %v852_v7, 4  ;;  %v989_v4 = vrot.slane %v988_v0, 1 }
 0x23b   :  { %v850_v16 = vrot.slane %v849_v3, 1  ;;  %v529_v17 = vmax.f32 %v493_v10, 0.0 }
 0x23c   :  { %v1784_v19 = vpop.eup %1783  ;;  %v993_v20 = vadd.f32 %v992_v11, %v991_v2  ;;  %v854_v21 = vmax.f32 %v852_v7, %v853_v12  ;;  %v990_v51 = vadd.f32 %v989_v4, %v988_v0 }
 0x23d   :  { %v1105_v22 = vmul.f32 %v1784_v19, %v2160_v6  ;;  %v851_v24 = vmax.f32 %v849_v3, %v850_v16  ;;  %563 = vrot.lane.b32.xlu1 %v529_v17, %s1883_s11 }
 0x23e   :  { %v994_v26 = vrot.slane %v993_v20, 2  ;;  %v855_v27 = vrot.slane %v854_v21, 2  ;;  %v770_v28 = vpop.f32.mrf.mxu3  ;;  %1787 = vrcp.f32 %v990_v51 }
 0x23f   :  { %v933_v29 = vsub.f32 %v804_v30, %v851_v24  ;;  %v806_v33 = vmul.f32 0.35355338, %v770_v28  ;;  %1693 = vmatmul.msk.f32.vlgmr.msra.gmra.mxu0 %vm816_vm5, %v1105_v22 }
 0x240   :  { %v2183_v34 = vpop.eup %1785  ;;  %v856_v35 = vmax.f32 %v854_v21, %v855_v27  ;;  %v494_v36 = vpop.f32.mrf.mxu2  ;;  %v995_v38 = vadd.f32 %v994_v26, %v993_v20 }
 0x241   :  { %v998_v39 = vsel %vm816_vm5, %v2183_v34, 0.0  ;;  %v953_v6 = vmul.f32 1.442695, %v933_v29  ;;  %v859_v13 = vsel %vm816_vm5, %v806_v33, -inf  ;;  %v495_v40 = vadd.f32 %v2158_v62, %v494_v36 }
 0x242   :  { %v999_v41 = vrot.slane %v998_v39, 4  ;;  %v857_v43 = vrot.slane %v856_v35, 1  ;;  %v860_v44 = vrot.slane %v859_v13, 4  ;;  %v996_v30 = vrot.slane %v995_v38, 1 }
 0x243   :  { %1789 = vpow2.f32 %v953_v6  ;;  %v530_v45 = vmax.f32 %v495_v40, 0.0 }
 0x244   :  { %v1788_v46 = vpop.eup %1787  ;;  %v1000_v48 = vadd.f32 %v999_v41, %v998_v39  ;;  %v858_v49 = vmax.f32 %v856_v35, %v857_v43  ;;  %v861_v52 = vmax.f32 %v859_v13, %v860_v44  ;;  %v997_v53 = vadd.f32 %v996_v30, %v995_v38 }
 0x245   :  { %565 = vrot.lane.b32.xlu0 %v530_v45, %s1883_s11  ;;  %v1106_v54 = vmul.f32 %v1788_v46, %v2167_v31 }
 0x246   :  { %v1001_v55 = vrot.slane %v1000_v48, 2  ;;  %v934_v56 = vsub.f32 %v805_v57, %v858_v49  ;;  %v862_v59 = vrot.slane %v861_v52, 2  ;;  %v773_v63 = vpop.f32.mrf.mxu3  ;;  %1791 = vrcp.f32 %v997_v53 }
 0x247   :  { %v807_v0 = vmul.f32 0.35355338, %v773_v63  ;;  %1694 = vmatmul.msk.f32.gmra.mxu0 %vm816_vm5, %v1106_v54 }
 0x248   :  { %v955_v2 = vmul.f32 1.442695, %v934_v56  ;;  %v863_v3 = vmax.f32 %v861_v52, %v862_v59  ;;  %v497_v7 = vpop.f32.mrf.mxu2  ;;  %v1002_v10 = vadd.f32 %v1001_v55, %v1000_v48 }
 0x249   :  { %v2192_v11 = vpop.eup %1789  ;;  %v866_v12 = vsel %vm816_vm5, %v807_v0, -inf  ;;  %v498_v4 = vadd.f32 %v2158_v62, %v497_v7 }
 0x24a   :  { %v1005_v31 = vsel %vm816_vm5, %v2192_v11, 0.0  ;;  %1793 = vpow2.f32 %v955_v2  ;;  %v864_v57 = vrot.slane %v863_v3, 1  ;;  %v867_v16 = vrot.slane %v866_v12, 4 }
 0x24b   :  { %v1006_v17 = vrot.slane %v1005_v31, 4  ;;  %v531_v19 = vmax.f32 %v498_v4, 0.0  ;;  %v1003_v20 = vrot.slane %v1002_v10, 1 }
 0x24c   :  { %v1792_v21 = vpop.eup %1791  ;;  %v865_v51 = vmax.f32 %v863_v3, %v864_v57  ;;  %v868_v22 = vmax.f32 %v866_v12, %v867_v16 }
 0x24d   :  { %v1007_v24 = vadd.f32 %v1006_v17, %v1005_v31  ;;  %567 = vrot.lane.b32.xlu2 %v531_v19, %s1883_s11  ;;  %v1107_v26 = vmul.f32 %v1792_v21, %v2174_v58  ;;  %v1004_v27 = vadd.f32 %v1003_v20, %v1002_v10 }
 0x24e   :  { %v935_v28 = vsub.f32 %v806_v33, %v865_v51  ;;  %v869_v29 = vrot.slane %v868_v22, 2  ;;  %v776_v35 = vpop.f32.mrf.mxu3 }
 0x24f   :  { %v1008_v36 = vrot.slane %v1007_v24, 2  ;;  %v808_v38 = vmul.f32 0.35355338, %v776_v35  ;;  %1695 = vmatmul.msk.f32.gmra.mxu0 %vm816_vm5, %v1107_v26  ;;  %1795 = vrcp.f32 %v1004_v27 }
 0x250   :  { %v2201_v39 = vpop.eup %1793  ;;  %v957_v6 = vmul.f32 1.442695, %v935_v28  ;;  %v870_v13 = vmax.f32 %v868_v22, %v869_v29  ;;  %v499_v40 = vpop.f32.mrf.mxu2 }
 0x251   :  { %v1012_v41 = vsel %vm816_vm5, %v2201_v39, 0.0  ;;  %v873_v43 = vsel %vm816_vm5, %v808_v38, -inf  ;;  %v500_v58 = vadd.f32 %v2158_v62, %v499_v40  ;;  %v1009_v33 = vadd.f32 %v1008_v36, %v1007_v24 }
 0x252   :  { %v1013_v44 = vrot.slane %v1012_v41, 4  ;;  %1797 = vpow2.f32 %v957_v6  ;;  %v871_v30 = vrot.slane %v870_v13, 1  ;;  %v874_v45 = vrot.slane %v873_v43, 4 }
 0x253   :  { %v532_v46 = vmax.f32 %v500_v58, 0.0  ;;  %v1010_v48 = vrot.slane %v1009_v33, 1 }
 0x254   :  { %v1014_v49 = vadd.f32 %v1013_v44, %v1012_v41  ;;  %v872_v52 = vmax.f32 %v870_v13, %v871_v30  ;;  %v875_v53 = vmax.f32 %v873_v43, %v874_v45 }
 0x255   :  { %v1796_v54 = vpop.eup %1795  ;;  %569 = vrot.lane.b32.xlu1 %v532_v46, %s1883_s11  ;;  %v1011_v55 = vadd.f32 %v1010_v48, %v1009_v33 }
 0x256   :  { %v1015_v56 = vrot.slane %v1014_v49, 2  ;;  %v936_v59 = vsub.f32 %v807_v0, %v872_v52  ;;  %v876_v63 = vrot.slane %v875_v53, 2  ;;  %v779_v2 = vpop.f32.mrf.mxu3  ;;  %v1108_v3 = vmul.f32 %v1796_v54, %v2183_v34 }
 0x257   :  { %v809_v7 = vmul.f32 0.35355338, %v779_v2  ;;  %1799 = vrcp.f32 %v1011_v55 }
 0x258   :  { %v2209_v10 = vpop.eup %1797  ;;  %v959_v12 = vmul.f32 1.442695, %v936_v59  ;;  %v877_v4 = vmax.f32 %v875_v53, %v876_v63  ;;  %1696 = vmatmul.msk.f32.gmra.mxu0 %vm816_vm5, %v1108_v3  ;;  %v502_v31 = vpop.f32.mrf.mxu2  ;;  %v1016_v57 = vadd.f32 %v1015_v56, %v1014_v49 }
 0x259   :  { %v1019_v16 = vsel %vm816_vm5, %v2209_v10, 0.0  ;;  %v880_v17 = vsel %vm816_vm5, %v809_v7, -inf  ;;  %v503_v0 = vadd.f32 %v2158_v62, %v502_v31 }
 0x25a   :  { %v1020_v19 = vrot.slane %v1019_v16, 4  ;;  %1801 = vpow2.f32 %v959_v12  ;;  %v878_v34 = vrot.slane %v877_v4, 1  ;;  %v881_v20 = vrot.slane %v880_v17, 4 }
 0x25b   :  { %v533_v21 = vmax.f32 %v503_v0, 0.0  ;;  %v1017_v51 = vrot.slane %v1016_v57, 1 }
 0x25c   :  { %v1021_v22 = vadd.f32 %v1020_v19, %v1019_v16  ;;  %v879_v24 = vmax.f32 %v877_v4, %v878_v34  ;;  %v882_v26 = vmax.f32 %v880_v17, %v881_v20 }
 0x25d   :  { %v1800_v27 = vpop.eup %1799  ;;  %571 = vrot.lane.b32.xlu0 %v533_v21, %s1883_s11  ;;  %v1018_v28 = vadd.f32 %v1017_v51, %v1016_v57 }
 0x25e   :  { %v1022_v29 = vrot.slane %v1021_v22, 2  ;;  %v937_v35 = vsub.f32 %v808_v38, %v879_v24  ;;  %v883_v36 = vrot.slane %v882_v26, 2  ;;  %v782_v6 = vpop.f32.mrf.mxu3  ;;  %v1109_v13 = vmul.f32 %v1800_v27, %v2192_v11 }
 0x25f   :  { %v810_v40 = vmul.f32 0.35355338, %v782_v6  ;;  %1803 = vrcp.f32 %v1018_v28 }
 0x260   :  { %v2218_v41 = vpop.eup %1801  ;;  %v961_v43 = vmul.f32 1.442695, %v937_v35  ;;  %v884_v58 = vmax.f32 %v882_v26, %v883_v36  ;;  %1697 = vmatmul.msk.f32.gmra.mxu0 %vm816_vm5, %v1109_v13  ;;  %v2221_v33 = vpop.f32.mrf.mxu2  ;;  %v1023_v44 = vadd.f32 %v1022_v29, %v1021_v22 }
 0x261   :  { %v1026_v30 = vsel %vm816_vm5, %v2218_v41, 0.0  ;;  %v887_v38 = vsel %vm816_vm5, %v810_v40, -inf }
 0x262   :  { %v1027_v45 = vrot.slane %v1026_v30, 4  ;;  %1805 = vpow2.f32 %v961_v43  ;;  %v885_v46 = vrot.slane %v884_v58, 1  ;;  %v888_v11 = vrot.slane %v887_v38, 4 }
 0x263   :  { %v1024_v48 = vrot.slane %v1023_v44, 1 }
 0x264   :  { %v1028_v49 = vadd.f32 %v1027_v45, %v1026_v30  ;;  %v886_v52 = vmax.f32 %v884_v58, %v885_v46  ;;  %v889_v53 = vmax.f32 %v887_v38, %v888_v11 }
 0x265   :  { %v1804_v54 = vpop.eup %1803  ;;  %v1025_v55 = vadd.f32 %v1024_v48, %v1023_v44 }
 0x266   :  { %v1029_v56 = vrot.slane %v1028_v49, 2  ;;  %v938_v59 = vsub.f32 %v809_v7, %v886_v52  ;;  %v890_v63 = vrot.slane %v889_v53, 2  ;;  %v785_v2 = vpop.f32.mrf.mxu3  ;;  %v1110_v3 = vmul.f32 %v1804_v54, %v2201_v39 }
 0x267   :  { %v811_v12 = vmul.f32 0.35355338, %v785_v2  ;;  %1807 = vrcp.f32 %v1025_v55 }
 0x268   :  { %v2227_v4 = vpop.eup %1805  ;;  %v963_v31 = vmul.f32 1.442695, %v938_v59  ;;  %v891_v57 = vmax.f32 %v889_v53, %v890_v63  ;;  %1698 = vmatmul.msk.f32.gmra.mxu0 %vm816_vm5, %v1110_v3  ;;  %v507_v16 = vpop.f32.mrf.mxu2  ;;  %v1030_v17 = vadd.f32 %v1029_v56, %v1028_v49 }
 0x269   :  { %v1033_v0 = vsel %vm816_vm5, %v2227_v4, 0.0  ;;  %v894_v19 = vsel %vm816_vm5, %v811_v12, -inf  ;;  %v508_v7 = vadd.f32 %v2158_v62, %v507_v16 }
 0x26a   :  { %v1034_v34 = vrot.slane %v1033_v0, 4  ;;  %1809 = vpow2.f32 %v963_v31  ;;  %v892_v39 = vrot.slane %v891_v57, 1  ;;  %v895_v20 = vrot.slane %v894_v19, 4 }
 0x26b   :  { %v535_v21 = vmax.f32 %v508_v7, 0.0  ;;  %v1031_v51 = vrot.slane %v1030_v17, 1 }
 0x26c   :  { %v1035_v22 = vadd.f32 %v1034_v34, %v1033_v0  ;;  %v893_v24 = vmax.f32 %v891_v57, %v892_v39  ;;  %v896_v26 = vmax.f32 %v894_v19, %v895_v20 }
 0x26d   :  { %v1808_v27 = vpop.eup %1807  ;;  %575 = vrot.lane.b32.xlu2 %v535_v21, %s1883_s11  ;;  %v1032_v28 = vadd.f32 %v1031_v51, %v1030_v17 }
 0x26e   :  { %v1036_v29 = vrot.slane %v1035_v22, 2  ;;  %v939_v35 = vsub.f32 %v810_v40, %v893_v24  ;;  %v897_v36 = vrot.slane %v896_v26, 2  ;;  %v788_v6 = vpop.f32.mrf.mxu3  ;;  %v1111_v13 = vmul.f32 %v1808_v27, %v2209_v10 }
 0x26f   :  { %v812_v43 = vmul.f32 0.35355338, %v788_v6  ;;  %1811 = vrcp.f32 %v1032_v28 }
 0x270   :  { %v2236_v58 = vpop.eup %1809  ;;  %v965_v44 = vmul.f32 1.442695, %v939_v35  ;;  %v898_v30 = vmax.f32 %v896_v26, %v897_v36  ;;  %1699 = vmatmul.msk.f32.gmra.mxu0 %vm816_vm5, %v1111_v13  ;;  %v509_v38 = vpop.f32.mrf.mxu2  ;;  %v1037_v45 = vadd.f32 %v1036_v29, %v1035_v22 }
 0x271   :  { %v1040_v46 = vsel %vm816_vm5, %v2236_v58, 0.0  ;;  %v901_v11 = vsel %vm816_vm5, %v812_v43, -inf  ;;  %v510_v40 = vadd.f32 %v2158_v62, %v509_v38 }
 0x272   :  { %v1041_v48 = vrot.slane %v1040_v46, 4  ;;  %1813 = vpow2.f32 %v965_v44  ;;  %v899_v10 = vrot.slane %v898_v30, 1  ;;  %v902_v49 = vrot.slane %v901_v11, 4 }
 0x273   :  { %v536_v52 = vmax.f32 %v510_v40, 0.0  ;;  %v1038_v53 = vrot.slane %v1037_v45, 1 }
 0x274   :  { %v1042_v54 = vadd.f32 %v1041_v48, %v1040_v46  ;;  %v900_v55 = vmax.f32 %v898_v30, %v899_v10  ;;  %v903_v56 = vmax.f32 %v901_v11, %v902_v49 }
 0x275   :  { %v1812_v59 = vpop.eup %1811  ;;  %577 = vrot.lane.b32.xlu0 %v536_v52, %s1883_s11  ;;  %v1039_v63 = vadd.f32 %v1038_v53, %v1037_v45 }
 0x276   :  { %v1043_v2 = vrot.slane %v1042_v54, 2  ;;  %v940_v3 = vsub.f32 %v811_v12, %v900_v55  ;;  %v904_v31 = vrot.slane %v903_v56, 2  ;;  %v791_v57 = vpop.f32.mrf.mxu3  ;;  %v1112_v16 = vmul.f32 %v1812_v59, %v2218_v41 }
 0x277   :  { %v813_v17 = vmul.f32 0.35355338, %v791_v57  ;;  %1815 = vrcp.f32 %v1039_v63 }
 0x278   :  { %v2245_v0 = vpop.eup %1813  ;;  %v967_v19 = vmul.f32 1.442695, %v940_v3  ;;  %v905_v7 = vmax.f32 %v903_v56, %v904_v31  ;;  %1700 = vmatmul.msk.f32.gmra.mxu0 %vm816_vm5, %v1112_v16  ;;  %v512_v34 = vpop.f32.mrf.mxu2  ;;  %v1044_v39 = vadd.f32 %v1043_v2, %v1042_v54 }
 0x279   :  { %v1047_v20 = vsel %vm816_vm5, %v2245_v0, 0.0  ;;  %v908_v21 = vsel %vm816_vm5, %v813_v17, -inf  ;;  %v513_v12 = vadd.f32 %v2158_v62, %v512_v34 }
 0x27a   :  { %v1048_v51 = vrot.slane %v1047_v20, 4  ;;  %1817 = vpow2.f32 %v967_v19  ;;  %v906_v41 = vrot.slane %v905_v7, 1  ;;  %v909_v22 = vrot.slane %v908_v21, 4 }
 0x27b   :  { %v537_v24 = vmax.f32 %v513_v12, 0.0  ;;  %v1045_v26 = vrot.slane %v1044_v39, 1 }
 0x27c   :  { %v1049_v27 = vadd.f32 %v1048_v51, %v1047_v20  ;;  %v907_v28 = vmax.f32 %v905_v7, %v906_v41  ;;  %v910_v29 = vmax.f32 %v908_v21, %v909_v22 }
 0x27d   :  { %v1816_v35 = vpop.eup %1815  ;;  %579 = vrot.lane.b32.xlu2 %v537_v24, %s1883_s11  ;;  %v1046_v36 = vadd.f32 %v1045_v26, %v1044_v39 }
 0x27e   :  { %v1050_v6 = vrot.slane %v1049_v27, 2  ;;  %v941_v13 = vsub.f32 %v812_v43, %v907_v28  ;;  %v911_v44 = vrot.slane %v910_v29, 2  ;;  %v794_v30 = vpop.f32.mrf.mxu3  ;;  %v1113_v38 = vmul.f32 %v1816_v35, %v2227_v4 }
 0x27f   :  { %v814_v45 = vmul.f32 0.35355338, %v794_v30  ;;  %1819 = vrcp.f32 %v1046_v36 }
 0x280   :  { %v2254_v46 = vpop.eup %1817  ;;  %v969_v11 = vmul.f32 1.442695, %v941_v13  ;;  %v912_v40 = vmax.f32 %v910_v29, %v911_v44  ;;  %1701 = vmatmul.msk.f32.gmra.mxu0 %vm816_vm5, %v1113_v38  ;;  %v514_v48 = vpop.f32.mrf.mxu2  ;;  %v1051_v10 = vadd.f32 %v1050_v6, %v1049_v27 }
 0x281   :  { %v1054_v49 = vsel %vm816_vm5, %v2254_v46, 0.0  ;;  %v915_v52 = vsel %vm816_vm5, %v814_v45, -inf  ;;  %v515_v43 = vadd.f32 %v2158_v62, %v514_v48 }
 0x282   :  { %v1055_v53 = vrot.slane %v1054_v49, 4  ;;  %1821 = vpow2.f32 %v969_v11  ;;  %v913_v4 = vrot.slane %v912_v40, 1  ;;  %v916_v54 = vrot.slane %v915_v52, 4 }
 0x283   :  { %v538_v55 = vmax.f32 %v515_v43, 0.0  ;;  %v1052_v56 = vrot.slane %v1051_v10, 1 }
 0x284   :  { %v1056_v59 = vadd.f32 %v1055_v53, %v1054_v49  ;;  %v914_v63 = vmax.f32 %v912_v40, %v913_v4  ;;  %v917_v2 = vmax.f32 %v915_v52, %v916_v54 }
 0x285   :  { %v1820_v3 = vpop.eup %1819  ;;  %581 = vrot.lane.b32.xlu1 %v538_v55, %s1883_s11  ;;  %v1053_v31 = vadd.f32 %v1052_v56, %v1051_v10 }
 0x286   :  { %v1057_v57 = vrot.slane %v1056_v59, 2  ;;  %v942_v16 = vsub.f32 %v813_v17, %v914_v63  ;;  %v918_v19 = vrot.slane %v917_v2, 2  ;;  %v797_v7 = vpop.f32.mrf.mxu3  ;;  %v1114_v34 = vmul.f32 %v1820_v3, %v2236_v58 }
 0x287   :  { %v815_v39 = vmul.f32 0.35355338, %v797_v7  ;;  %1823 = vrcp.f32 %v1053_v31 }
 0x288   :  { %v2263_v20 = vpop.eup %1821  ;;  %v971_v21 = vmul.f32 1.442695, %v942_v16  ;;  %v919_v12 = vmax.f32 %v917_v2, %v918_v19  ;;  %1702 = vmatmul.msk.f32.gmra.mxu0 %vm816_vm5, %v1114_v34  ;;  %v517_v51 = vpop.f32.mrf.mxu2  ;;  %v1058_v41 = vadd.f32 %v1057_v57, %v1056_v59  ;;  %v505_v16 = vadd.f32 %v2158_v62, %v2221_v33 }
 0x289   :  { %v1061_v22 = vsel %vm816_vm5, %v2263_v20, 0.0  ;;  %v922_v24 = vsel %vm816_vm5, %v815_v39, -inf  ;;  %v518_v17 = vadd.f32 %v2158_v62, %v517_v51 }
 0x28a   :  { %v1062_v26 = vrot.slane %v1061_v22, 4  ;;  %1825 = vpow2.f32 %v971_v21  ;;  %v920_v58 = vrot.slane %v919_v12, 1  ;;  %v923_v27 = vrot.slane %v922_v24, 4 }
 0x28b   :  { %v539_v28 = vmax.f32 %v518_v17, 0.0  ;;  %v1059_v29 = vrot.slane %v1058_v41, 1 }
 0x28c   :  { %v1063_v35 = vadd.f32 %v1062_v26, %v1061_v22  ;;  %v921_v36 = vmax.f32 %v919_v12, %v920_v58  ;;  %v924_v6 = vmax.f32 %v922_v24, %v923_v27 }
 0x28d   :  { %v1824_v13 = vpop.eup %1823  ;;  %583 = vrot.lane.b32.xlu0 %v539_v28, %s1883_s11  ;;  %v1060_v44 = vadd.f32 %v1059_v29, %v1058_v41 }
 0x28e   :  { %v1064_v30 = vrot.slane %v1063_v35, 2  ;;  %v943_v38 = vsub.f32 %v814_v45, %v921_v36  ;;  %v925_v11 = vrot.slane %v924_v6, 2  ;;  %v1115_v40 = vmul.f32 %v1824_v13, %v2245_v0 }
 0x28f   :  { %1827 = vrcp.f32 %v1060_v44  ;;  %v562_v28 = vpop.permute.xlu2 %561 }
 0x290   :  { %v1826_v48 = vpop.eup %1825  ;;  %v973_v10 = vmul.f32 1.442695, %v943_v38  ;;  %v926_v49 = vmax.f32 %v924_v6, %v925_v11  ;;  %1703 = vmatmul.msk.f32.gmra.mxu0 %vm816_vm5, %v1115_v40  ;;  %v519_v52 = vpop.f32.mrf.mxu2  ;;  %v1065_v43 = vadd.f32 %v1064_v30, %v1063_v35  ;;  %v608_v38 = vadd.f32 %v562_v28, %v2053_v9 }
 0x291   :  { %v1068_v53 = vsel %vm816_vm5, %v1826_v48, 0.0  ;;  %v520_v4 = vadd.f32 %v2158_v62, %v519_v52 }
 0x292   :  { %v1069_v54 = vrot.slane %v1068_v53, 4  ;;  %1829 = vpow2.f32 %v973_v10  ;;  %v927_v55 = vrot.slane %v926_v49, 1  ;;  %v1066_v56 = vrot.slane %v1065_v43, 1 }
 0x293   :  { %v540_v45 = vmax.f32 %v520_v4, 0.0 }
 0x294   :  { %v1070_v59 = vadd.f32 %v1069_v54, %v1068_v53  ;;  %v928_v63 = vmax.f32 %v926_v49, %v927_v55  ;;  %v1067_v0 = vadd.f32 %v1066_v56, %v1065_v43 }
 0x295   :  { %v1828_v2 = vpop.eup %1827  ;;  %585 = vrot.lane.b32.xlu2 %v540_v45, %s1883_s11 }
 0x296   :  { %v1071_v3 = vrot.slane %v1070_v59, 2  ;;  %v944_v31 = vsub.f32 %v815_v39, %v928_v63  ;;  %v1116_v57 = vmul.f32 %v1828_v2, %v2254_v46  ;;  %1831 = vrcp.f32 %v1067_v0 }
 0x297   :  { %v534_v39 = vmax.f32 %v505_v16, 0.0 }
 0x298   :  { %v1830_v19 = vpop.eup %1829  ;;  %v975_v7 = vmul.f32 1.442695, %v944_v31  ;;  %1704 = vmatmul.msk.f32.gmra.mxu0 %vm816_vm5, %v1116_v57  ;;  %v522_v34 = vpop.f32.mrf.mxu2  ;;  %v1072_v21 = vadd.f32 %v1071_v3, %v1070_v59 }
 0x299   :  { %v1075_v12 = vsel %vm816_vm5, %v1830_v19, 0.0  ;;  %v523_v51 = vadd.f32 %v2158_v62, %v522_v34 }
 0x29a   :  { %v1076_v41 = vrot.slane %v1075_v12, 4  ;;  %1833 = vpow2.f32 %v975_v7  ;;  %v1073_v22 = vrot.slane %v1072_v21, 1 }
 0x29b   :  { %v541_v24 = vmax.f32 %v523_v51, 0.0 }
 0x29c   :  { %v1832_v46 = vpop.eup %1831  ;;  %v1077_v17 = vadd.f32 %v1076_v41, %v1075_v12  ;;  %v1074_v26 = vadd.f32 %v1073_v22, %v1072_v21 }
 0x29d   :  { %573 = vrot.lane.b32.xlu2 %v534_v39, %s1883_s11  ;;  %587 = vrot.lane.b32.xlu1 %v541_v24, %s1883_s11  ;;  %v1117_v33 = vmul.f32 %v1832_v46, %v2263_v20 }
 0x29e   :  { %v1078_v58 = vrot.slane %v1077_v17, 2  ;;  %1835 = vrcp.f32 %v1074_v26 }
 0x29f   :  { %v560_v6 = vpop.permute.xlu1 %559 }
 0x2a0   :  { %v1834_v27 = vpop.eup %1833  ;;  %1705 = vmatmul.msk.f32.gmra.mxu0 %vm816_vm5, %v1117_v33  ;;  %v524_v29 = vpop.f32.mrf.mxu2  ;;  %v1079_v35 = vadd.f32 %v1078_v58, %v1077_v17  ;;  %v607_v10 = vadd.f32 %v560_v6, %v2048_v5 }
 0x2a1   :  { %v1082_v36 = vsel %vm816_vm5, %v1834_v27, 0.0  ;;  %v525_v13 = vadd.f32 %v2158_v62, %v524_v29 }
 0x2a2   :  { %v1083_v44 = vrot.slane %v1082_v36, 4  ;;  %v1080_v30 = vrot.slane %v1079_v35, 1 }
 0x2a3   :  { %v542_v11 = vmax.f32 %v525_v13, 0.0 }
 0x2a4   :  { %v1836_v40 = vpop.eup %1835  ;;  %v1084_v20 = vadd.f32 %v1083_v44, %v1082_v36  ;;  %v1081_v49 = vadd.f32 %v1080_v30, %v1079_v35 }
 0x2a5   :  { %589 = vrot.lane.b32.xlu0 %v542_v11, %s1883_s11  ;;  %1258 = vrot.lane.b32.xlu2 %v608_v38, %s1881_s26  ;;  %v1118_v52 = vmul.f32 %v1836_v40, %v1826_v48 }
 0x2a6   :  { %v1085_v43 = vrot.slane %v1084_v20, 2  ;;  %1256 = vrot.lane.b32.xlu1 %v607_v10, %s1881_s26  ;;  %1837 = vrcp.f32 %v1081_v49 }
 0x2a7   :  { %v568_v53 = vpop.permute.xlu2 %567 }
 0x2a8   :  { %v1086_v62 = vadd.f32 %v1085_v43, %v1084_v20  ;;  %1706 = vmatmul.msk.f32.gmra.mxu0 %vm816_vm5, %v1118_v52  ;;  %v611_v4 = vadd.f32 %v568_v53, %v2078_v32 }
 0x2aa   :  { %v1087_v9 = vrot.slane %v1086_v62, 1 }
 0x2ac   :  { %v1838_v54 = vpop.eup %1837  ;;  %v1088_v55 = vadd.f32 %v1087_v9, %v1086_v62 }
 0x2ad   :  { %1264 = vrot.lane.b32.xlu0 %v611_v4, %s1881_s26  ;;  %v1119_v5 = vmul.f32 %v1838_v54, %v1830_v19 }
 0x2ae   :  { %1839 = vrcp.f32 %v1088_v55 }
 0x2af   :  { %v564_v56 = vpop.permute.xlu1 %563 }
 0x2b0   :  { %v609_v48 = vadd.f32 %v564_v56, %v2063_v15  ;;  %1707 = vmatmul.msk.f32.gmra.mxu0 %vm816_vm5, %v1119_v5 }
 0x2b2   :  { %1260 = vrot.lane.b32.xlu2 %v609_v48, %s1881_s26 }
 0x2b4   :  { %v1840_v45 = vpop.eup %1839 }
 0x2b5   :  { %v1120_v59 = vmul.f32 %v1840_v45, %v1834_v27 }
 0x2b7   :  { %v566_v63 = vpop.permute.xlu0 %565 }
 0x2b8   :  { %v610_v0 = vadd.f32 %v566_v63, %v2072_v23  ;;  %1708 = vmatmul.msk.f32.gmra.mxu0 %vm816_vm5, %v1120_v59 }
 0x2ba   :  { %1262 = vrot.lane.b32.xlu1 %v610_v0, %s1881_s26 }
 0x2bc   :  { %v1192_v34 = vpop.f32.mrf.mxu0 }
 0x2c7   :  { %v576_v32 = vpop.permute.xlu2 %575  ;;  %v570_v2 = vpop.permute.xlu1 %569 }
 0x2c8   :  { %v615_v3 = vadd.f32 %v576_v32, %v2066_v18  ;;  %v612_v31 = vadd.f32 %v570_v2, %v2086_v42 }
 0x2ca   :  { %1272 = vrot.lane.b32.xlu0 %v615_v3, %s1881_s26  ;;  %1266 = vrot.lane.b32.xlu2 %v612_v31, %s1881_s26 }
 0x2cf   :  { %v572_v15 = vpop.permute.xlu0 %571 }
 0x2d0   :  { %v613_v57 = vadd.f32 %v572_v15, %v2092_v50 }
 0x2d2   :  { %1268 = vrot.lane.b32.xlu1 %v613_v57, %s1881_s26 }
 0x2d7   :  { %v580_v23 = vpop.permute.xlu2 %579 }
 0x2d8   :  { %v617_v16 = vadd.f32 %v580_v23, %v2112_v14  ;;  %v1195_v14 = vpop.f32.mrf.mxu0 }
 0x2da   :  { %1276 = vrot.lane.b32.xlu0 %v617_v16, %s1881_s26 }
 0x2e0   :  { %v1198_v22 = vpop.f32.mrf.mxu0 }
 0x2e7   :  { %v578_v19 = vpop.permute.xlu0 %577 }
 0x2e8   :  { %v616_v7 = vadd.f32 %v578_v19, %v2102_v1  ;;  %v1201_v17 = vpop.f32.mrf.mxu0 }
 0x2ea   :  { %1274 = vrot.lane.b32.xlu1 %v616_v7, %s1881_s26 }
 0x2ef   :  { %v586_v18 = vpop.permute.xlu2 %585 }
 0x2f0   :  { %v620_v42 = vadd.f32 %v586_v18, %v2133_v47  ;;  %v1204_v6 = vpop.f32.mrf.mxu0 }
 0x2f2   :  { %1282 = vrot.lane.b32.xlu0 %v620_v42, %s1881_s26 }
 0x2f7   :  { %v574_v21 = vpop.permute.xlu2 %573  ;;  %v582_v50 = vpop.permute.xlu1 %581 }
 0x2f8   :  { %v614_v12 = vadd.f32 %v574_v21, %v2099_v60  ;;  %v618_v51 = vadd.f32 %v582_v50, %v2121_v25  ;;  %v1207_v43 = vpop.f32.mrf.mxu0 }
 0x2fa   :  { %1270 = vrot.lane.b32.xlu0 %v614_v12, %s1881_s26  ;;  %1278 = vrot.lane.b32.xlu2 %v618_v51, %s1881_s26 }
 0x2ff   :  { %v584_v1 = vpop.permute.xlu0 %583  ;;  %v1259_v47 = vpop.permute.xlu2 %1258 }
 0x300   :  { %v619_v41 = vadd.f32 %v584_v1, %v2126_v37  ;;  %v1305_v39 = vmul.f32 %v1259_v47, %v1195_v14  ;;  %v1210_v5 = vpop.f32.mrf.mxu0 }
 0x302   :  { %1280 = vrot.lane.b32.xlu1 %v619_v41, %s1881_s26  ;;  %v1327_v60 = vsel %vm98_vm0, %v1305_v39, 0.0 }
 0x303   :  { %v1328_v58 = vrot.slane %v1327_v60, 4 }
 0x305   :  { %v1329_v37 = vadd.f32 %v1328_v58, %v1327_v60 }
 0x307   :  { %v1330_v44 = vrot.slane %v1329_v37, 2 }
 0x308   :  { %v1213_v56 = vpop.f32.mrf.mxu0 }
 0x30c   :  { %v1261_v24 = vpop.permute.xlu2 %1260 }
 0x30d   :  { %v1306_v46 = vmul.f32 %v1261_v24, %v1198_v22 }
 0x30f   :  { %v588_v26 = vpop.permute.xlu1 %587  ;;  %v1334_v25 = vsel %vm98_vm0, %v1306_v46, 0.0 }
 0x310   :  { %v621_v33 = vadd.f32 %v588_v26, %v2140_v61  ;;  %v1335_v27 = vrot.slane %v1334_v25, 4  ;;  %v1331_v61 = vadd.f32 %v1330_v44, %v1329_v37  ;;  %v1216_v48 = vpop.f32.mrf.mxu0 }
 0x312   :  { %1284 = vrot.lane.b32.xlu2 %v621_v33, %s1881_s26  ;;  %v1336_v28 = vadd.f32 %v1335_v27, %v1334_v25  ;;  %v1332_v49 = vrot.slane %v1331_v61, 1 }
 0x314   :  { %v1337_v30 = vrot.slane %v1336_v28, 2 }
 0x316   :  { %v1338_v20 = vadd.f32 %v1337_v30, %v1336_v28 }
 0x317   :  { %v590_v29 = vpop.permute.xlu0 %589 }
 0x318   :  { %v622_v35 = vadd.f32 %v590_v29, %v2146_v8  ;;  %v1257_v36 = vpop.permute.xlu1 %1256  ;;  %v1339_v62 = vrot.slane %v1338_v20, 1  ;;  %v1333_v8 = vadd.f32 %v1332_v49, %v1331_v61  ;;  %v1219_v45 = vpop.f32.mrf.mxu0 }
 0x319   :  { %v1304_v13 = vmul.f32 %v1257_v36, %v1192_v34 }
 0x31a   :  { %1286 = vrot.lane.b32.xlu1 %v622_v35, %s1881_s26  ;;  %v1340_v4 = vadd.f32 %v1339_v62, %v1338_v20 }
 0x31b   :  { %v1320_v38 = vsel %vm98_vm0, %v1304_v13, 0.0 }
 0x31c   :  { %v1321_v11 = vrot.slane %v1320_v38, 4 }
 0x31e   :  { %v1322_v40 = vadd.f32 %v1321_v11, %v1320_v38 }
 0x31f   :  { %v1265_v59 = vpop.permute.xlu0 %1264 }
 0x320   :  { %v1323_v10 = vrot.slane %v1322_v40, 2  ;;  %v1222_v32 = vpop.f32.mrf.mxu0  ;;  %v1308_v57 = vmul.f32 %v1265_v59, %v1204_v6 }
 0x322   :  { %v1324_v52 = vadd.f32 %v1323_v10, %v1322_v40  ;;  %v1348_v18 = vsel %vm98_vm0, %v1308_v57, 0.0 }
 0x323   :  { %v1349_v12 = vrot.slane %v1348_v18, 4 }
 0x324   :  { %v1325_v53 = vrot.slane %v1324_v52, 1  ;;  %v1267_v3 = vpop.permute.xlu2 %1266 }
 0x325   :  { %v1309_v23 = vmul.f32 %v1267_v3, %v1207_v43  ;;  %v1350_v47 = vadd.f32 %v1349_v12, %v1348_v18 }
 0x326   :  { %v1326_v9 = vadd.f32 %v1325_v53, %v1324_v52 }
 0x327   :  { %v1355_v34 = vsel %vm98_vm0, %v1309_v23, 0.0 }
 0x328   :  { %v1449_v54 = vsel %vm1448_vm7, %v1333_v8, %v1326_v9  ;;  %v1225_v42 = vpop.f32.mrf.mxu0  ;;  %v1356_v51 = vrot.slane %v1355_v34, 4 }
 0x329   :  { %v1451_v55 = vsel %vm1450_vm8, %v1340_v4, %v1449_v54 }
 0x32a   :  { %v1357_v22 = vadd.f32 %v1356_v51, %v1355_v34  ;;  %v1851_v34 = vld [vmem:[%s2411_s0] sm:$0xff] }
 0x32c   :  { %v1263_v63 = vpop.permute.xlu1 %1262  ;;  %v1358_v60 = vrot.slane %v1357_v22, 2 }
 0x32d   :  { %v1307_v2 = vmul.f32 %v1263_v63, %v1201_v17  ;;  %v1351_v17 = vrot.slane %v1350_v47, 2 }
 0x32e   :  { %v1359_v28 = vadd.f32 %v1358_v60, %v1357_v22 }
 0x32f   :  { %v1341_v31 = vsel %vm98_vm0, %v1307_v2, 0.0  ;;  %v1352_v27 = vadd.f32 %v1351_v17, %v1350_v47 }
 0x330   :  { %v1342_v16 = vrot.slane %v1341_v31, 4  ;;  %v1228_v46 = vpop.f32.mrf.mxu0  ;;  %v1360_v11 = vrot.slane %v1359_v28, 1 }
 0x331   :  { %v1353_v44 = vrot.slane %v1352_v27, 1 }
 0x332   :  { %v1343_v21 = vadd.f32 %v1342_v16, %v1341_v31 }
 0x333   :  { %v1354_v53 = vadd.f32 %v1353_v44, %v1352_v27 }
 0x334   :  { %v1344_v1 = vrot.slane %v1343_v21, 2 }
 0x336   :  { %v1345_v24 = vadd.f32 %v1344_v1, %v1343_v21 }
 0x338   :  { %v1346_v25 = vrot.slane %v1345_v24, 1  ;;  %v1231_v61 = vpop.f32.mrf.mxu0 }
 0x33a   :  { %v1347_v6 = vadd.f32 %v1346_v25, %v1345_v24 }
 0x33c   :  { %v1273_v0 = vpop.permute.xlu0 %1272  ;;  %v1453_v49 = vsel %vm1452_vm9, %v1347_v6, %v1451_v55 }
 0x33d   :  { %v1312_v30 = vmul.f32 %v1273_v0, %v1216_v48 }
 0x33f   :  { %v1376_v8 = vsel %vm98_vm0, %v1312_v30, 0.0 }
 0x340   :  { %v1377_v59 = vrot.slane %v1376_v8, 4  ;;  %v1234_v18 = vpop.f32.mrf.mxu0 }
 0x344   :  { %v1269_v15 = vpop.permute.xlu1 %1268 }
 0x345   :  { %v1310_v19 = vmul.f32 %v1269_v15, %v1210_v5  ;;  %v1361_v5 = vadd.f32 %v1360_v11, %v1359_v28 }
 0x347   :  { %v1362_v50 = vsel %vm98_vm0, %v1310_v19, 0.0  ;;  %v1378_v19 = vadd.f32 %v1377_v59, %v1376_v8 }
 0x348   :  { %v1363_v14 = vrot.slane %v1362_v50, 4 }
 0x349   :  { %v1379_v47 = vrot.slane %v1378_v19, 2 }
 0x34a   :  { %v1364_v39 = vadd.f32 %v1363_v14, %v1362_v50 }
 0x34c   :  { %v1277_v7 = vpop.permute.xlu0 %1276  ;;  %v1365_v26 = vrot.slane %v1364_v39, 2 }
 0x34d   :  { %v1314_v52 = vmul.f32 %v1277_v7, %v1222_v32 }
 0x34e   :  { %v1366_v29 = vadd.f32 %v1365_v26, %v1364_v39  ;;  %v1380_v26 = vadd.f32 %v1379_v47, %v1378_v19 }
 0x34f   :  { %v1390_v63 = vsel %vm98_vm0, %v1314_v52, 0.0 }
 0x350   :  { %v1367_v40 = vrot.slane %v1366_v29, 1  ;;  %v1391_v31 = vrot.slane %v1390_v63, 4 }
 0x352   :  { %v1392_v14 = vadd.f32 %v1391_v31, %v1390_v63 }
 0x354   :  { %v1279_v20 = vpop.permute.xlu2 %1278  ;;  %v1393_v60 = vrot.slane %v1392_v14, 2 }
 0x355   :  { %v1315_v48 = vmul.f32 %v1279_v20, %v1225_v42 }
 0x356   :  { %v1394_v28 = vadd.f32 %v1393_v60, %v1392_v14 }
 0x357   :  { %v1397_v15 = vsel %vm98_vm0, %v1315_v48, 0.0 }
 0x358   :  { %v1398_v50 = vrot.slane %v1397_v15, 4  ;;  %v1395_v30 = vrot.slane %v1394_v28, 1 }
 0x35a   :  { %v1399_v39 = vadd.f32 %v1398_v50, %v1397_v15 }
 0x35c   :  { %v1275_v33 = vpop.permute.xlu1 %1274 }
 0x35d   :  { %v1313_v35 = vmul.f32 %v1275_v33, %v1219_v45  ;;  %v1455_v45 = vsel %vm1454_vm10, %v1354_v53, %v1453_v49 }
 0x35e   :  { %v1457_v3 = vsel %vm1456_vm11, %v1361_v5, %v1455_v45 }
 0x35f   :  { %v1383_v10 = vsel %vm98_vm0, %v1313_v35, 0.0 }
 0x360   :  { %v1384_v9 = vrot.slane %v1383_v10, 4 }
 0x362   :  { %v1385_v0 = vadd.f32 %v1384_v9, %v1383_v10 }
 0x364   :  { %v1283_v41 = vpop.permute.xlu0 %1282  ;;  %v1386_v12 = vrot.slane %v1385_v0, 2 }
 0x365   :  { %v1317_v57 = vmul.f32 %v1283_v41, %v1231_v61 }
 0x366   :  { %v1387_v24 = vadd.f32 %v1386_v12, %v1385_v0 }
 0x367   :  { %v1411_v1 = vsel %vm98_vm0, %v1317_v57, 0.0 }
 0x368   :  { %v1388_v27 = vrot.slane %v1387_v24, 1 }
 0x36c   :  { %v1271_v58 = vpop.permute.xlu0 %1270  ;;  %v1285_v23 = vpop.permute.xlu2 %1284 }
 0x36d   :  { %v1311_v37 = vmul.f32 %v1271_v58, %v1213_v56  ;;  %v1368_v56 = vadd.f32 %v1367_v40, %v1366_v29  ;;  %v1318_v51 = vmul.f32 %v1285_v23, %v1234_v18  ;;  %v1400_v58 = vrot.slane %v1399_v39, 2  ;;  %v1853_v18 = vld [vmem:[%s2416_s5] sm:$0xff] }
 0x36e   :  { %v1381_v29 = vrot.slane %v1380_v26, 1 }
 0x36f   :  { %v1369_v36 = vsel %vm98_vm0, %v1311_v37, 0.0  ;;  %v1459_v16 = vsel %vm1458_vm12, %v1368_v56, %v1457_v3  ;;  %v1418_v17 = vsel %vm98_vm0, %v1318_v51, 0.0  ;;  %v1401_v6 = vadd.f32 %v1400_v58, %v1399_v39 }
 0x370   :  { %v1370_v13 = vrot.slane %v1369_v36, 4  ;;  %v1419_v25 = vrot.slane %v1418_v17, 4  ;;  %v1382_v11 = vadd.f32 %v1381_v29, %v1380_v26 }
 0x371   :  { %v1402_v49 = vrot.slane %v1401_v6, 1 }
 0x372   :  { %v1371_v38 = vadd.f32 %v1370_v13, %v1369_v36  ;;  %v1420_v35 = vadd.f32 %v1419_v25, %v1418_v17  ;;  %v1389_v13 = vadd.f32 %v1388_v27, %v1387_v24 }
 0x373   :  { %v1403_v5 = vadd.f32 %v1402_v49, %v1401_v6 }
 0x374   :  { %v1372_v43 = vrot.slane %v1371_v38, 2  ;;  %v1281_v62 = vpop.permute.xlu1 %1280  ;;  %v1421_v40 = vrot.slane %v1420_v35, 2  ;;  %v1462_v52 = vsel %vm1448_vm7, %v1389_v13, %v1382_v11 }
 0x375   :  { %v1316_v54 = vmul.f32 %v1281_v62, %v1228_v46  ;;  %v1412_v46 = vrot.slane %v1411_v1, 4  ;;  %v1396_v62 = vadd.f32 %v1395_v30, %v1394_v28 }
 0x376   :  { %v1373_v4 = vadd.f32 %v1372_v43, %v1371_v38  ;;  %v1237_v38 = vpop.f32.mrf.mxu0 }
 0x377   :  { %v1404_v2 = vsel %vm98_vm0, %v1316_v54, 0.0  ;;  %v1413_v37 = vadd.f32 %v1412_v46, %v1411_v1  ;;  %v1463_v9 = vsel %vm1450_vm8, %v1396_v62, %v1462_v52 }
 0x378   :  { %v1374_v55 = vrot.slane %v1373_v4, 1  ;;  %v1405_v42 = vrot.slane %v1404_v2, 4  ;;  %v1464_v59 = vsel %vm1452_vm9, %v1403_v5, %v1463_v9  ;;  %v1773_v9 = vld [vmem:[%s2417_s6 + $0x5] ss:$0 sm:$0xff] }
 0x379   :  { %v1414_v44 = vrot.slane %v1413_v37, 2 }
 0x37a   :  { %v1375_v32 = vadd.f32 %v1374_v55, %v1373_v4  ;;  %v1406_v22 = vadd.f32 %v1405_v42, %v1404_v2  ;;  %v1422_v4 = vadd.f32 %v1421_v40, %v1420_v35  ;;  %v1884_v42 = vmov 32.0  }
 0x37b   :  { %v1415_v43 = vadd.f32 %v1414_v44, %v1413_v37  ;;  %1841 = vrcp.f32 %v1884_v42 }
 0x37c   :  { %v1461_v7 = vsel %vm1460_vm13, %v1375_v32, %v1459_v16  ;;  %v1407_v33 = vrot.slane %v1406_v22, 2  ;;  %v1423_v63 = vrot.slane %v1422_v4, 1  ;;  %v1852_v16 = vld [vmem:[%s2411_s0 + $0x8] sm:$0xff] }
 0x37d   :  { %v2347_v21 = vadd.f32 %v1851_v34, %v1461_v7  ;;  %v1416_v56 = vrot.slane %v1415_v43, 1 }
 0x37e   :  { %v1408_v36 = vadd.f32 %v1407_v33, %v1406_v22  ;;  %v1424_v31 = vadd.f32 %v1423_v63, %v1422_v4  ;;  %v1854_v33 = vld [vmem:[%s2416_s5 + $0x8] sm:$0xff] }
 0x37f   :  { %v1473_v41 = vsel %vm98_vm0, %v2347_v21, 0.0  ;;  %v1417_v0 = vadd.f32 %v1416_v56, %v1415_v43  ;;  %v1772_v43 = vld [vmem:[%s2417_s6 + $0x4] ss:$0 sm:$0xff] }
 0x380   :  { %1474 = vadd.xlane.f32.xlu2 %v1473_v41  ;;  %v1409_v20 = vrot.slane %v1408_v36, 1 }
 0x381   :  { %v1842_v34 = vpop.eup %1841 }
 0x382   :  { %v1410_v54 = vadd.f32 %v1409_v20, %v1408_v36  ;;  %v1480_v50 = vmul.f32 32.0, %v1842_v34  ;;  %vm1484_vm14 = vweird.f32 %v1842_v34 }
 0x384   :  { %v1465_v55 = vsel %vm1454_vm10, %v1410_v54, %v1464_v59  ;;  %v1481_v12 = vsub.f32 1.0, %v1480_v50  ;;  %v1774_v59 = vld [vmem:[%s2417_s6 + $0x3] ss:$0 sm:$0xff] }
 0x385   :  { %v1466_v3 = vsel %vm1456_vm11, %v1417_v0, %v1465_v55 }
 0x386   :  { %v1467_v57 = vsel %vm1458_vm12, %v1424_v31, %v1466_v3  ;;  %v1482_v51 = vmul.f32 %v1842_v34, %v1481_v12 }
 0x388   :  { %v1483_v14 = vadd.f32 %v1842_v34, %v1482_v51 }
 0x38a   :  { %v2369_v1 = vsel %vm1484_vm14, %v1842_v34, %v1483_v14 }
 0x38c   :  { %v1287_v61 = vpop.permute.xlu1 %1286 }
 0x38d   :  { %v1319_v10 = vmul.f32 %v1287_v61, %v1237_v38 }
 0x38f   :  { %v1425_v53 = vsel %vm98_vm0, %v1319_v10, 0.0 }
 0x390   :  { %v1426_v8 = vrot.slane %v1425_v53, 4 }
 0x392   :  { %v1427_v48 = vadd.f32 %v1426_v8, %v1425_v53 }
 0x394   :  { %v1428_v45 = vrot.slane %v1427_v48, 2 }
 0x396   :  { %v1429_v32 = vadd.f32 %v1428_v45, %v1427_v48 }
 0x398   :  { %v1430_v2 = vrot.slane %v1429_v32, 1 }
 0x39a   :  { %v1431_v15 = vadd.f32 %v1430_v2, %v1429_v32 }
 0x39c   :  { %v1468_v23 = vsel %vm1460_vm13, %v1431_v15, %v1467_v57 }
 0x39d   :  { %v1472_v19 = vadd.f32 %v1852_v16, %v1468_v23 }
 0x39f   :  { %v1476_v7 = vsel %vm98_vm0, %v1472_v19, 0.0 }
 0x3a0   :  { %1477 = vadd.xlane.f32.xlu0 %v1476_v7 }
 0x3b4   :  { %1532 = vrot.lane.b32.xlu0 %v1853_v18, %s1883_s11 }
 0x3f3   :  { %v1475_v41 = vpop.xlane.xlu2 %1474 }
 0x3f4   :  { %v1486_v47 = vmul.f32 %v2369_v1, %v1475_v41 }
 0x3f6   :  { %v1488_v22 = vsub.f32 %v2347_v21, %v1486_v47 }
 0x3f8   :  { %v1490_v39 = vmul.f32 %v1488_v22, %v1488_v22 }
 0x3fa   :  { %v1492_v24 = vsel %vm98_vm0, %v1490_v39, 0.0 }
 0x3fb   :  { %1493 = vadd.xlane.f32.xlu1 %v1492_v24 }
 0x413   :  { %v1478_v46 = vpop.xlane.xlu0 %1477 }
 0x414   :  { %v1487_v17 = vmul.f32 %v2369_v1, %v1478_v46 }
 0x416   :  { %v1489_v60 = vsub.f32 %v1472_v19, %v1487_v17 }
 0x418   :  { %v1491_v26 = vmul.f32 %v1489_v60, %v1489_v60 }
 0x41a   :  { %v1495_v25 = vsel %vm98_vm0, %v1491_v26, 0.0 }
 0x41b   :  { %1496 = vadd.xlane.f32.xlu2 %v1495_v25 }
 0x426   :  { %v1533_v38 = vpop.permute.xlu0 %1532 }
 0x433   :  { %1534 = vrot.lane.b32.xlu2 %v1854_v33, %s1883_s11  ;;  %v1775_v33 = vld [vmem:[%s2417_s6 + $0x6] ss:$0 sm:$0xff] }
 0x46e   :  { %v1494_v58 = vpop.xlane.xlu1 %1493 }
 0x46f   :  { %v1498_v21 = vmul.f32 %v1494_v58, %v2369_v1 }
 0x471   :  { %v1500_v27 = vadd.f32 1e-05, %v1498_v21 }
 0x473   :  { %1843 = vrsqrt.f32 %v1500_v27  ;;  %vm1508_vm1 = vweird.f32 %v1500_v27 }
 0x479   :  { %v1844_v37 = vpop.eup %1843 }
 0x47a   :  { %v1503_v28 = vmul.f32 %v1844_v37, %v1500_v27  ;;  %vm1509_vm15 = vweird.f32 %v1844_v37  ;;  %v1776_v27 = vld [vmem:[%s2417_s6 + $0x7] ss:$0 sm:$0xff]  ;;  %s1886_s6 = smov 128  }
 0x47b   :  { %vm1510_vm2 = vmor %vm1508_vm1, %vm1509_vm15 }
 0x47c   :  { %v1504_v29 = vmul.f32 %v1844_v37, %v1503_v28 }
 0x47e   :  { %v1505_v13 = vmul.f32 0.5, %v1504_v29 }
 0x480   :  { %v1506_v44 = vsub.f32 1.5, %v1505_v13 }
 0x482   :  { %v1507_v61 = vmul.f32 %v1844_v37, %v1506_v44 }
 0x484   :  { %v1511_v10 = vsel %vm1510_vm2, %v1844_v37, %v1507_v61 }
 0x485   :  { %v1522_v62 = vmul.f32 %v1511_v10, %v1488_v22 }
 0x487   :  { %v1525_v4 = vmul.f32 %v1772_v43, %v1522_v62 }
 0x489   :  { %v1528_v56 = vadd.f32 %v1773_v9, %v1525_v4 }
 0x48e   :  { %v1497_v35 = vpop.xlane.xlu2 %1496 }
 0x48f   :  { %v1499_v36 = vmul.f32 %v1497_v35, %v2369_v1 }
 0x491   :  { %v1501_v6 = vadd.f32 1e-05, %v1499_v36 }
 0x493   :  { %1845 = vrsqrt.f32 %v1501_v6  ;;  %vm1518_vm4 = vweird.f32 %v1501_v6 }
 0x496   :  { %v1535_v30 = vpop.permute.xlu2 %1534 }
 0x497   :  { %1547 = vmatpush.bf16.msrb.mxu1 %v1535_v30 }
 0x499   :  { %v1846_v11 = vpop.eup %1845 }
 0x49a   :  { %v1513_v40 = vmul.f32 %v1846_v11, %v1501_v6  ;;  %vm1519_vm3 = vweird.f32 %v1846_v11 }
 0x49b   :  { %1548 = vmatpush.bf16.msrb.mxu1 %v1533_v38  ;;  %vm1520_vm5 = vmor %vm1518_vm4, %vm1519_vm3 }
 0x49c   :  { %v1514_v20 = vmul.f32 %v1846_v11, %v1513_v40 }
 0x49e   :  { %v1515_v49 = vmul.f32 0.5, %v1514_v20 }
 0x4a0   :  { %v1516_v52 = vsub.f32 1.5, %v1515_v49 }
 0x4a2   :  { %v1517_v53 = vmul.f32 %v1846_v11, %v1516_v52 }
 0x4a4   :  { %v1521_v8 = vsel %vm1520_vm5, %v1846_v11, %v1517_v53 }
 0x4a5   :  { %v1523_v54 = vmul.f32 %v1521_v8, %v1489_v60 }
 0x4a7   :  { %v1526_v5 = vmul.f32 %v1772_v43, %v1523_v54 }
 0x4a9   :  { %v1529_v48 = vadd.f32 %v1773_v9, %v1526_v5 }
 0x4ab   :  { %v1530_v45 = vpack.c.bf16 %v1529_v48, %v1528_v56 }
 0x4ad   :  { %1709 = vmatmul.msk.bf16.vlgmr.msrb.gmra.mxu1 %vm98_vm0, %v1530_v45 }
 0x52a   :  { %v1550_v63 = vpop.f32.mrf.mxu1 }
 0x52b   :  { %v1551_v55 = vadd.f32 %v1774_v59, %v1550_v63 }
 0x52d   :  { %v1555_v0 = vsel %vm98_vm0, %v1551_v55, 0.0 }
 0x52e   :  { %1556 = vadd.xlane.f32.xlu1 %v1555_v0 }
 0x532   :  { %v1552_v32 = vpop.f32.mrf.mxu1 }
 0x533   :  { %v1553_v2 = vadd.f32 %v1774_v59, %v1552_v32 }
 0x535   :  { %v1558_v3 = vsel %vm98_vm0, %v1553_v2, 0.0 }
 0x536   :  { %1559 = vadd.xlane.f32.xlu1 %v1558_v3 }
 0x5a1   :  { %v1557_v31 = vpop.xlane.xlu1 %1556 }
 0x5a2   :  { %v1561_v15 = vmul.f32 %v1557_v31, %v2369_v1 }
 0x5a4   :  { %v1563_v57 = vsub.f32 %v1551_v55, %v1561_v15 }
 0x5a6   :  { %v1565_v23 = vmul.f32 %v1563_v57, %v1563_v57 }
 0x5a8   :  { %v1567_v16 = vsel %vm98_vm0, %v1565_v23, 0.0 }
 0x5a9   :  { %1568 = vadd.xlane.f32.xlu1 %v1567_v16  ;;  %v1560_v19 = vpop.xlane.xlu1 %1559 }
 0x5aa   :  { %v1562_v7 = vmul.f32 %v1560_v19, %v2369_v1 }
 0x5ac   :  { %v1564_v18 = vsub.f32 %v1553_v2, %v1562_v7 }
 0x5ae   :  { %v1566_v42 = vmul.f32 %v1564_v18, %v1564_v18 }
 0x5b0   :  { %v1570_v34 = vsel %vm98_vm0, %v1566_v42, 0.0 }
 0x5b1   :  { %1571 = vadd.xlane.f32.xlu0 %v1570_v34 }
 0x61c   :  { %v1569_v50 = vpop.xlane.xlu1 %1568 }
 0x61d   :  { %v1573_v12 = vmul.f32 %v1569_v50, %v2369_v1 }
 0x61f   :  { %v1575_v51 = vadd.f32 1e-05, %v1573_v12 }
 0x621   :  { %1847 = vrsqrt.f32 %v1575_v51  ;;  %vm1583_vm7 = vweird.f32 %v1575_v51 }
 0x624   :  { %v1572_v14 = vpop.xlane.xlu0 %1571 }
 0x625   :  { %v1574_v41 = vmul.f32 %v1572_v14, %v2369_v1 }
 0x627   :  { %v1848_v47 = vpop.eup %1847  ;;  %v1576_v22 = vadd.f32 1e-05, %v1574_v41 }
 0x628   :  { %v1578_v39 = vmul.f32 %v1848_v47, %v1575_v51  ;;  %vm1584_vm6 = vweird.f32 %v1848_v47 }
 0x629   :  { %1849 = vrsqrt.f32 %v1576_v22  ;;  %vm1585_vm8 = vmor %vm1583_vm7, %vm1584_vm6  ;;  %vm1593_vm10 = vweird.f32 %v1576_v22 }
 0x62a   :  { %v1579_v24 = vmul.f32 %v1848_v47, %v1578_v39 }
 0x62c   :  { %v1580_v46 = vmul.f32 0.5, %v1579_v24 }
 0x62e   :  { %v1581_v17 = vsub.f32 1.5, %v1580_v46 }
 0x62f   :  { %v1850_v60 = vpop.eup %1849 }
 0x630   :  { %v1582_v26 = vmul.f32 %v1848_v47, %v1581_v17  ;;  %v1588_v25 = vmul.f32 %v1850_v60, %v1576_v22  ;;  %vm1594_vm9 = vweird.f32 %v1850_v60 }
 0x631   :  { %vm1595_vm11 = vmor %vm1593_vm10, %vm1594_vm9 }
 0x632   :  { %v1586_v58 = vsel %vm1585_vm8, %v1848_v47, %v1582_v26  ;;  %v1589_v21 = vmul.f32 %v1850_v60, %v1588_v25 }
 0x633   :  { %v1597_v1 = vmul.f32 %v1586_v58, %v1563_v57 }
 0x634   :  { %v1590_v37 = vmul.f32 0.5, %v1589_v21 }
 0x635   :  { %v1600_v28 = vmul.f32 %v1775_v33, %v1597_v1 }
 0x636   :  { %v1591_v29 = vsub.f32 1.5, %v1590_v37 }
 0x637   :  { %v1603_v35 = vadd.f32 %v1776_v27, %v1600_v28 }
 0x638   :  { %v1592_v36 = vmul.f32 %v1850_v60, %v1591_v29 }
 0x639   :  { %1605 = vst.msk [vmem:[#allocation2] sm:$0xff] %vm98_vm0, %v1603_v35 }
 0x63a   :  { %v1596_v6 = vsel %vm1595_vm11, %v1850_v60, %v1592_v36 }
 0x63b   :  { %v1598_v13 = vmul.f32 %v1596_v6, %v1564_v18 }
 0x63d   :  { %v1601_v44 = vmul.f32 %v1775_v33, %v1598_v13 }
 0x63f   :  { %v1604_v30 = vadd.f32 %v1776_v27, %v1601_v44 }
 0x641   :  { %1606 = vst.msk [vmem:[#allocation2 + $0x8] sm:$0xff] %vm98_vm0, %v1604_v30 }
 0x642   :  { %1619 = dma.vmem_to_hbm [thread:$0]  %s1612_s25, 256, %s1614_s29, [#allocation3], %s1886_s6, %s1886_s6, %s1887_s30  }
 0x643   :  { %1879 = dma.done.wait [#allocation3], 256  }
 0x644   :  { %1880 = vsyncadd [#allocation3], 4294967040 }
 0x645   :  { %1624 = vsyncpa [#allocation3], 1 }

</bundles_post_ra>
